<compile_context>
chip_gen: v5e
topology: v5e:2x2
jax: 0.10.0
libtpu: 0.0.40
codegen_flags: <defaults>
</compile_context>

<pallas_src>
import functools

import jax
import jax.numpy as jnp
from jax.experimental import pallas as pl
from jax.experimental.pallas import tpu as pltpu


_LANE = 128


def _round_up(x, m):
    return ((x + m - 1) // m) * m


# ----------------------------------------------------------------------------
# Pallas encoder kernel (one grid step = `imgs_per_tile` whole images).
# ----------------------------------------------------------------------------
def _encoder_kernel(x_ref, wconv_ref, bconv_ref, wfc_ref, bfc_ref, o_ref, *,
                    imgs_per_tile, hw):
    """x_ref:     (imgs_per_tile*hw, 9*Cin)  bf16   im2col tap rows
       wconv_ref: (9*Cin, Cout_p)            bf16
       bconv_ref: (1, Cout_p)                f32
       wfc_ref:   (Cout_p, D_p)              f32
       bfc_ref:   (1, D_p)                   f32
       o_ref:     (imgs_per_tile, D_p)       f32
    """
    cout_p = wconv_ref.shape[1]

    # Conv3x3 folded into a single K = 9*Cin contraction (one MXU matmul,
    # bf16 inputs, f32 accumulate).
    h = jnp.dot(x_ref[...], wconv_ref[...], preferred_element_type=jnp.float32)

    # Bias + ReLU in f32 on the VPU (lane-dense: Cout padded to 128).
    h = jnp.maximum(h + bconv_ref[...], 0.0)                 # (m_tile, Cout_p)

    # Global average pool: split the row axis per image (layout-free since hw
    # is a multiple of 8) and reduce over sublanes on the XLU.
    pooled = jnp.sum(h.reshape(imgs_per_tile, hw, cout_p), axis=1) * (1.0 / hw)

    # Linear projection head (tiny; keep f32 for accuracy).
    out = jnp.dot(pooled, wfc_ref[...], preferred_element_type=jnp.float32)
    o_ref[...] = (out + bfc_ref[...]).astype(o_ref.dtype)


# ----------------------------------------------------------------------------
# Parameter preparation: torch layouts -> kernel layouts (lane-padded).
# ----------------------------------------------------------------------------
def prepare_encoder_params(wconv_torch, bconv, wfc, bfc):
    """wconv_torch: (Cout, Cin, 3, 3), bconv: (Cout,), wfc: (Cout, D), bfc: (D,)."""
    cout, cin, kh, kw = wconv_torch.shape
    assert (kh, kw) == (3, 3)
    d = wfc.shape[1]
    cout_p = _round_up(cout, _LANE)
    d_p = _round_up(d, _LANE)

    # (Cout,Cin,3,3) -> (kh,kw,Cin,Cout) -> (9*Cin, Cout); zero-pad the output
    # channel axis to a multiple of 128 so h / pooled / out are lane-dense.
    w_taps = jnp.transpose(wconv_torch, (2, 3, 1, 0)).reshape(9 * cin, cout)
    w_taps = jnp.pad(w_taps, ((0, 0), (0, cout_p - cout))).astype(jnp.bfloat16)
    b_conv = jnp.pad(bconv, (0, cout_p - cout)).reshape(1, cout_p).astype(jnp.float32)
    w_fc = jnp.pad(wfc, ((0, cout_p - cout), (0, d_p - d))).astype(jnp.float32)
    b_fc = jnp.pad(bfc, (0, d_p - d)).reshape(1, d_p).astype(jnp.float32)

    return dict(w_taps=w_taps, b_conv=b_conv, w_fc=w_fc, b_fc=b_fc,
                cin=cin, cout=cout, d=d, cout_p=cout_p, d_p=d_p)


# ----------------------------------------------------------------------------
# Encoder wrapper: NCHW images -> (N, embed_dim) features via the Pallas kernel.
# ----------------------------------------------------------------------------
def encoder_forward(x_nchw, params):
    w_taps, b_conv, w_fc, b_fc = (params["w_taps"], params["b_conv"],
                                  params["w_fc"], params["b_fc"])
    d, d_p, cout_p = params["d"], params["d_p"], params["cout_p"]

    n, c, h, w = x_nchw.shape
    hw = h * w
    k = 9 * c
    assert hw % 8 == 0, "H*W must be a multiple of 8 for the pooling reshape"

    # Tile over images: a multiple of 8 images per block keeps the
    # (imgs_per_tile, D_p) output block sublane-aligned, and >=512 rows per
    # block keeps the DMA pipeline near the HBM roofline.  Per-step working
    # set (2x double-buffered taps + h + weights) is well under the 16 MiB
    # scoped-VMEM default of every TPU generation for typical image sizes.
    imgs_per_tile = 8
    while imgs_per_tile * hw < 512:
        imgs_per_tile += 8
    n_pad = _round_up(max(n, imgs_per_tile), imgs_per_tile)
    n_tiles = n_pad // imgs_per_tile
    m_tile = imgs_per_tile * hw

    # Wrapper-side glue: NCHW -> NHWC, zero-pad spatially, im2col into
    # (M, 9*Cin) bf16 rows (taps*channels on the lane axis).
    # TODO(synk): form the 9 shifted taps in-kernel from a VMEM-resident padded
    # image block to remove the remaining 9x HBM read amplification.
    x = jnp.transpose(x_nchw, (0, 2, 3, 1)).astype(jnp.float32)      # NHWC
    if n_pad != n:
        x = jnp.pad(x, ((0, n_pad - n), (0, 0), (0, 0), (0, 0)))
    xp = jnp.pad(x, ((0, 0), (1, 1), (1, 1), (0, 0)))
    taps = jnp.concatenate(
        [xp[:, i:i + h, j:j + w, :] for i in range(3) for j in range(3)],
        axis=-1)                                                     # (N_pad,H,W,9*Cin)
    taps = taps.reshape(n_pad * hw, k).astype(jnp.bfloat16)

    kernel = functools.partial(_encoder_kernel,
                               imgs_per_tile=imgs_per_tile, hw=hw)

    flops = 2 * n_pad * hw * k * cout_p + 2 * n_pad * cout_p * d_p
    bytes_accessed = (taps.size * 2 + w_taps.size * 2
                      + (b_conv.size + w_fc.size + b_fc.size) * 4
                      + n_pad * d_p * 4)

    out = pl.pallas_call(
        kernel,
        out_shape=jax.ShapeDtypeStruct((n_pad, d_p), jnp.float32),
        grid=(n_tiles,),
        in_specs=[
            pl.BlockSpec((m_tile, k), lambda i: (i, 0)),      # tap rows (tiled)
            pl.BlockSpec((k, cout_p), lambda i: (0, 0)),      # conv weights
            pl.BlockSpec((1, cout_p), lambda i: (0, 0)),      # conv bias
            pl.BlockSpec((cout_p, d_p), lambda i: (0, 0)),    # fc weights
            pl.BlockSpec((1, d_p), lambda i: (0, 0)),         # fc bias
        ],
        out_specs=pl.BlockSpec((imgs_per_tile, d_p), lambda i: (i, 0)),
        compiler_params=pltpu.CompilerParams(
            dimension_semantics=("parallel",)),                # v7x: 2 TCs split images
        cost_estimate=pl.CostEstimate(
            flops=flops, transcendentals=0, bytes_accessed=bytes_accessed),
    )(taps, w_taps, b_conv, w_fc, b_fc)

    return out[:n, :d]


# ----------------------------------------------------------------------------
# ProtoCLR_fea.forward equivalent.
# ----------------------------------------------------------------------------
def protoclr_fea_forward(data, params, n_support=1, n_query=1):
    """data: (ways, n_support+n_query, C, H, W) float32 (NCHW images)."""
    data = data[None]                                   # (1, ways, S+Q, C, H, W)
    batch_size, ways = data.shape[0], data.shape[1]
    c, h, w = data.shape[-3:]

    x_support = data[:, :, :n_support].reshape(batch_size, ways * n_support, c, h, w)
    x_query = data[:, :, n_support:].reshape(batch_size, ways * n_query, c, h, w)

    y_query = jnp.tile(jnp.arange(ways)[None, :, None],
                       (batch_size, 1, n_query)).reshape(batch_size, -1)
    y_support = jnp.tile(jnp.arange(ways)[None, :, None],
                         (batch_size, 1, n_support)).reshape(batch_size, -1)
    del y_query, y_support  # computed for parity with the torch module; unused

    x = jnp.concatenate([x_support, x_query], axis=1)   # (B, N, C, H, W)
    n_imgs = x.shape[1]

    z = encoder_forward(x.reshape(batch_size * n_imgs, c, h, w), params)
    z = z.reshape(batch_size, n_imgs, -1)

    z_support = z[:, : ways * n_support]
    z_query = z[:, ways * n_support:]
    del z_query
    if n_support == 1:
        z_proto = z_support
    else:
        # TODO(synk): get_prototypes (per-class mean) for n_support > 1 is not
        # implemented; the torch module only returns z, so this is dead code.
        z_proto = z_support
    del z_proto
    return z


# ----------------------------------------------------------------------------
# Pure-JAX reference of the same encoder math (bf16 matmul inputs, f32 acc).
# ----------------------------------------------------------------------------
def _encoder_reference(x_nchw, wconv_torch, bconv, wfc, bfc):
    y = jax.lax.conv_general_dilated(
        x_nchw.astype(jnp.bfloat16), wconv_torch.astype(jnp.bfloat16),
        window_strides=(1, 1), padding="SAME",
        dimension_numbers=("NCHW", "OIHW", "NCHW"),
        preferred_element_type=jnp.float32)
    y = jax.nn.relu(y + bconv[None, :, None, None])
    pooled = jnp.mean(y, axis=(2, 3))                   # (N, Cout)
    return pooled @ wfc + bfc[None, :]


if __name__ == "__main__":
    WAYS, N_SUPPORT, N_QUERY = 8, 1, 1
    CIN, H, W = 4, 16, 16
    COUT, EMBED = 32, 64

    key = jax.random.PRNGKey(0)
    k_wc, k_bc, k_wf, k_bf, k_data = jax.random.split(key, 5)

    # Deterministic synthetic encoder weights (torch conv layout: (Cout,Cin,kh,kw)).
    wconv_torch = 0.1 * jax.random.normal(k_wc, (COUT, CIN, 3, 3), jnp.float32)
    bconv = 0.01 * jax.random.normal(k_bc, (COUT,), jnp.float32)
    wfc = 0.1 * jax.random.normal(k_wf, (COUT, EMBED), jnp.float32)
    bfc = 0.01 * jax.random.normal(k_bf, (EMBED,), jnp.float32)

    params = prepare_encoder_params(wconv_torch, bconv, wfc, bfc)

    # batch['data']: (ways, n_support + n_query, C, H, W)
    data = jax.random.normal(
        k_data, (WAYS, N_SUPPORT + N_QUERY, CIN, H, W), jnp.float32)

    z = protoclr_fea_forward(data, params, n_support=N_SUPPORT, n_query=N_QUERY)
    z = jax.block_until_ready(z)
    assert z.shape == (1, WAYS * (N_SUPPORT + N_QUERY), EMBED)

    # Cross-check the Pallas encoder against a plain-JAX conv reference.
    x_sup = data[:, :N_SUPPORT].reshape(WAYS * N_SUPPORT, CIN, H, W)
    x_qry = data[:, N_SUPPORT:].reshape(WAYS * N_QUERY, CIN, H, W)
    x_cat = jnp.concatenate([x_sup, x_qry], axis=0)
    z_ref = _encoder_reference(x_cat, wconv_torch, bconv, wfc, bfc)
    assert jnp.allclose(z[0], z_ref, rtol=2e-3, atol=2e-3), "mismatch vs reference"

    print("KERNEL_OK")
</pallas_src>

<mosaic_0001>
module attributes {stable_mosaic.version = 11 : i64} {
  func.func @_encoder_kernel(%arg0: i32, %arg1: memref<2048x36xbf16, #tpu.memory_space<vmem>>, %arg2: memref<36x128xbf16, #tpu.memory_space<vmem>>, %arg3: memref<1x128xf32, #tpu.memory_space<vmem>>, %arg4: memref<128x128xf32, #tpu.memory_space<vmem>>, %arg5: memref<1x128xf32, #tpu.memory_space<vmem>>, %arg6: memref<8x128xf32, #tpu.memory_space<vmem>>) attributes {dimension_semantics = [#tpu.dimension_semantics<parallel>], iteration_bounds = array<i64: 2>, scalar_prefetch = 0 : i64, scratch_operands = 0 : i64, tpu.core_type = #tpu.core_type<tc>, window_params = [{transform_indices = @transform_0, window_bounds = array<i64: 2048, 36>}, {pipeline_mode = #tpu.pipeline_mode<synchronous>, transform_indices = @transform_1, window_bounds = array<i64: 36, 128>}, {pipeline_mode = #tpu.pipeline_mode<synchronous>, transform_indices = @transform_2, window_bounds = array<i64: 1, 128>}, {pipeline_mode = #tpu.pipeline_mode<synchronous>, transform_indices = @transform_3, window_bounds = array<i64: 128, 128>}, {pipeline_mode = #tpu.pipeline_mode<synchronous>, transform_indices = @transform_4, window_bounds = array<i64: 1, 128>}, {transform_indices = @transform_5, window_bounds = array<i64: 8, 128>}]} {
    %c0 = arith.constant 0 : index
    %c0_0 = arith.constant 0 : index
    %0 = vector.load %arg1[%c0, %c0_0] : memref<2048x36xbf16, #tpu.memory_space<vmem>>, vector<2048x36xbf16>
    %c0_1 = arith.constant 0 : index
    %c0_2 = arith.constant 0 : index
    %1 = vector.load %arg2[%c0_1, %c0_2] : memref<36x128xbf16, #tpu.memory_space<vmem>>, vector<36x128xbf16>
    %cst = arith.constant dense<0.000000e+00> : vector<2048x128xf32>
    %2 = tpu.matmul %0, %1, %cst {dimension_numbers = #tpu.dot_dimension_numbers<[1], [0], [0], [1], [0, 0, 1, 1], [], []>} : vector<2048x36xbf16>, vector<36x128xbf16>, vector<2048x128xf32> -> vector<2048x128xf32>
    %c0_3 = arith.constant 0 : index
    %c0_4 = arith.constant 0 : index
    %3 = vector.load %arg3[%c0_3, %c0_4] : memref<1x128xf32, #tpu.memory_space<vmem>>, vector<1x128xf32>
    %4 = vector.broadcast %3 : vector<1x128xf32> to vector<2048x128xf32>
    %5 = arith.addf %2, %4 : vector<2048x128xf32>
    %cst_5 = arith.constant 0.000000e+00 : f32
    %6 = vector.broadcast %cst_5 : f32 to vector<2048x128xf32>
    %7 = arith.maximumf %5, %6 : vector<2048x128xf32>
    %8 = vector.shape_cast %7 : vector<2048x128xf32> to vector<8x256x128xf32>
    %cst_6 = arith.constant dense<0.000000e+00> : vector<8x128xf32>
    %9 = vector.multi_reduction <add>, %8, %cst_6 [1] : vector<8x256x128xf32> to vector<8x128xf32>
    %cst_7 = arith.constant 3.906250e-03 : f32
    %10 = vector.broadcast %cst_7 : f32 to vector<8x128xf32>
    %11 = arith.mulf %9, %10 : vector<8x128xf32>
    %c0_8 = arith.constant 0 : index
    %c0_9 = arith.constant 0 : index
    %12 = vector.load %arg4[%c0_8, %c0_9] : memref<128x128xf32, #tpu.memory_space<vmem>>, vector<128x128xf32>
    %cst_10 = arith.constant dense<0.000000e+00> : vector<8x128xf32>
    %13 = tpu.matmul %11, %12, %cst_10 {dimension_numbers = #tpu.dot_dimension_numbers<[1], [0], [0], [1], [0, 0, 1, 1], [], []>} : vector<8x128xf32>, vector<128x128xf32>, vector<8x128xf32> -> vector<8x128xf32>
    %c0_11 = arith.constant 0 : index
    %c0_12 = arith.constant 0 : index
    %14 = vector.load %arg5[%c0_11, %c0_12] : memref<1x128xf32, #tpu.memory_space<vmem>>, vector<1x128xf32>
    %15 = vector.broadcast %14 : vector<1x128xf32> to vector<8x128xf32>
    %16 = arith.addf %13, %15 : vector<8x128xf32>
    %c0_13 = arith.constant 0 : index
    %c0_14 = arith.constant 0 : index
    %17 = vector.load %arg6[%c0_13, %c0_14] : memref<8x128xf32, #tpu.memory_space<vmem>>, vector<8x128xf32>
    tpu.vector_store %arg6[%c0_13, %c0_14], %16 {strides = array<i32>} : memref<8x128xf32, #tpu.memory_space<vmem>>, vector<8x128xf32>,
    return
  }
  func.func @transform_0(%arg0: i32) -> (i32, i32) {
    %c0_i32 = arith.constant 0 : i32
    %c0_i32_0 = arith.constant 0 : i32
    return %arg0, %c0_i32 : i32, i32
  }
  func.func @transform_1(%arg0: i32) -> (i32, i32) {
    %c0_i32 = arith.constant 0 : i32
    %c0_i32_0 = arith.constant 0 : i32
    %c0_i32_1 = arith.constant 0 : i32
    return %c0_i32, %c0_i32_0 : i32, i32
  }
  func.func @transform_2(%arg0: i32) -> (i32, i32) {
    %c0_i32 = arith.constant 0 : i32
    %c0_i32_0 = arith.constant 0 : i32
    %c0_i32_1 = arith.constant 0 : i32
    return %c0_i32, %c0_i32_0 : i32, i32
  }
  func.func @transform_3(%arg0: i32) -> (i32, i32) {
    %c0_i32 = arith.constant 0 : i32
    %c0_i32_0 = arith.constant 0 : i32
    %c0_i32_1 = arith.constant 0 : i32
    return %c0_i32, %c0_i32_0 : i32, i32
  }
  func.func @transform_4(%arg0: i32) -> (i32, i32) {
    %c0_i32 = arith.constant 0 : i32
    %c0_i32_0 = arith.constant 0 : i32
    %c0_i32_1 = arith.constant 0 : i32
    return %c0_i32, %c0_i32_0 : i32, i32
  }
  func.func @transform_5(%arg0: i32) -> (i32, i32) {
    %c0_i32 = arith.constant 0 : i32
    %c0_i32_0 = arith.constant 0 : i32
    return %arg0, %c0_i32 : i32, i32
  }
}

</mosaic_0001>

<bundles_post_ra>
// kernel: tpu_custom_call.1
= control target key start
LH: loop header
LB: loop body
LE: loop exit
PB: predicated region body
PF: predicated region fallthrough
CT: control target
= control target key end

     0   :  { %10 = vsyncpa [#allocation3], 0  ;;  %s4670_s0 = inlined_call_operand.vmem [shape: bf16[4096,36], index: 0, kind: input, shape index: {}]   ;;  %s4671_s1 = inlined_call_operand.vmem [shape: bf16[36,128], index: 1, kind: input, shape index: {}]   ;;  %s4672_s2 = inlined_call_operand.vmem [shape: f32[1,128], index: 2, kind: input, shape index: {}]   ;;  %s4673_s3 = inlined_call_operand.vmem [shape: f32[128,128], index: 3, kind: input, shape index: {}]   ;;  %s4674_s4 = inlined_call_operand.vmem [shape: f32[1,128], index: 4, kind: input, shape index: {}]   ;;  %s4675_s5 = inlined_call_operand.hbm [shape: f32[16,128], index: 5, kind: output, shape index: {}]  }
   0x1   :  { %12 = vsyncpa [#allocation3 + $0x1], 0  ;;  %s3818_s18 = smov 0   ;;  %s3820_s19 = smov 0  }
   0x2   :  { %s3822_s20 = smov 0   ;;  %s3824_s21 = smov 0  }
   0x3 LB: > { %s3839_s22 = sadd.s32 4294967295, %s3786_s21   ;;  %s2883_s23 = sadd.s32 4294967294, %s3786_s21   ;;  %s3786_s21 = sphi %s3824_s21, %s4698_s21   ;;  %s3782_s20 = sphi %s3822_s20, %s4697_s20   ;;  %s3778_s19 = sphi %s3820_s19, %s4696_s19   ;;  %s3774_s18 = sphi %s3818_s18, %s4695_s18  }
   0x4   : > { %s3843_s24 = sadd.s32 1, %s3786_s21   ;;  %s135_s25 = sadd.s32 1, %s3782_s20 }
   0x5   : > { %s132_s26 = ssub.s32 %s3786_s21, %s3843_s24  ;;  %p145_p0 = scmp.ne.s32.totalorder %s3782_s20, %s3778_s19 }
   0x6   : > { %p133_p1 = scmp.eq.s32.totalorder %s132_s26, 0  ;;  %p146_p2 = scmp.eq.s32.totalorder %s3839_s22, 1 }
   0x7   : > { %p151_p3 = scmp.ne.s32.totalorder %s3778_s19, %s3774_s18  ;;  %p152_p4 = scmp.eq.s32.totalorder %s2883_s23, 1 }
   0x8   : > { %s3854_s27 = scalar_select %p133_p1, %s3782_s20, %s135_s25  }
   0x9   : > { %p3856_p5 = por %p146_p2, %p145_p0  ;;  %p3860_p6 = por %p152_p4, %p151_p3 }
   0xa   : > { %p2886_p7 = scmp.ge.s32.totalorder %s3786_s21, 1  ;;  %p191_p8 = scmp.lt.s32.totalorder %s3786_s21, 3 }
   0xc   : > { %p192_p9 = pnand %p2886_p7, %p191_p8 }
   0xe   : > { %195 = sbr.rel (%p192_p9) target bundleno = 899 (0x383), region = 40 }
  0x13   : > { %v486_v0 = vld [vmem:[%s4671_s1 + $0x10] sm:$0x3]  ;;  %s2888_s7 = sshll.u32 %s3839_s22, 8  ;;  %vm1531_vm0 = vcmask 1041408   ;;  %v3671_v4 = vld [vmem:[%s4671_s1 + $0x8] sm:$0xff]  ;;  %v3670_v5 = vld [vmem:[%s4671_s1] sm:$0xff] }
  0x14   : > { %v1140_v1 = vunpack.c.l.b16 %v486_v0  ;;  %p220_p10 = scmp.lt.s32.totalorder %s2888_s7, 511  ;;  %vm1146_vm1 = vcmask 293888   ;;  %v3954_v44 = vld [vmem:[%s4672_s2] ss:$0 sm:$0xff]  ;;  %vm2772_vm2 = vcmask 1041409   ;;  %vm2774_vm3 = vcmask 1042434  }
  0x15   : > { %vm2776_vm4 = vcmask 1043459   ;;  %vm2778_vm5 = vcmask 1044484   ;;  %vm2780_vm6 = vcmask 1045509   ;;  %vm2782_vm7 = vcmask 1046534   ;;  %s3744_s6 = scalar_lea.hbm %s4675_s5, 16 }
  0x16   : > { %v1143_v2 = vpack.c.b16 %v1140_v1, %v1140_v1  ;;  %s4700_s7 = smov (!%p220_p10, %s2888_s7), 511  ;;  %vm2784_vm8 = vcmask 1047559  }
  0x17   : > { %s2889_s10 = sshll.u32 %s4700_s7, 2  ;;  %s216_s7 = sand.u32 1, %s3778_s19  }
  0x18   : > { %v1533_v3 = vsel %vm1531_vm0, %v1143_v2, 0  ;;  %s3879_s15 = scalar_lea.vmem %s4670_s0, %s2889_s10  ;;  %s2887_s8 = sshll.u32 %s216_s7, 3 }
  0x19   : > { %1540 = vmatpush.bf16.msra.mxu0 %v1533_v3  ;;  %3672 = vmatpush.bf16.msra.mxu1 %v1533_v3  ;;  %v3542_v6 = vld [vmem:[%s3879_s15] sm:$0xff]  ;;  %v3575_v7 = vld [vmem:[%s3879_s15 + $0x108] sm:$0xff]  ;;  %v3604_v8 = vld [vmem:[%s3879_s15 + $0x1f0] sm:$0xff]  ;;  %s218_s14 = scalar_lea.vmem [#allocation2], %s2887_s8  ;;  %s2809_s23 = scalar_lea.sflag [#allocation3], %s216_s7 }
  0x1a   : > { %3673 = vmatpush.bf16.msra.mxu2 %v1533_v3  ;;  %3674 = vmatpush.bf16.msra.mxu3 %v1533_v3  ;;  %v3637_v9 = vld [vmem:[%s3879_s15 + $0x2f8] sm:$0xff]  ;;  %v3543_v10 = vld [vmem:[%s3879_s15 + $0x8] sm:$0xff]  ;;  %v3576_v11 = vld [vmem:[%s3879_s15 + $0x110] sm:$0xff]  ;;  %s2821_s16 = sshll.u32 %s218_s14, 4  ;;  %s2822_s16 = int_to_ptr.vmem [resolvable:$true] %s2821_s16 }
  0x1b   : > { %v3605_v12 = vld [vmem:[%s3879_s15 + $0x1f8] sm:$0xff]  ;;  %v3638_v13 = vld [vmem:[%s3879_s15 + $0x300] sm:$0xff]  ;;  %v3544_v14 = vld [vmem:[%s3879_s15 + $0x10] sm:$0xff] }
  0x1c   : > { %v3577_v15 = vld [vmem:[%s3879_s15 + $0x118] sm:$0xff]  ;;  %v3606_v16 = vld [vmem:[%s3879_s15 + $0x200] sm:$0xff]  ;;  %v3639_v17 = vld [vmem:[%s3879_s15 + $0x308] sm:$0xff] }
  0x1d   : > { %1541 = vmatpush.bf16.msra.mxu0 %v3671_v4  ;;  %3675 = vmatpush.bf16.msra.mxu1 %v3671_v4  ;;  %v3545_v18 = vld [vmem:[%s3879_s15 + $0x18] sm:$0xff]  ;;  %v3578_v19 = vld [vmem:[%s3879_s15 + $0x120] sm:$0xff]  ;;  %v3607_v20 = vld [vmem:[%s3879_s15 + $0x208] sm:$0xff] }
  0x1e   : > { %3676 = vmatpush.bf16.msra.mxu2 %v3671_v4  ;;  %3677 = vmatpush.bf16.msra.mxu3 %v3671_v4  ;;  %v3640_v21 = vld [vmem:[%s3879_s15 + $0x310] sm:$0xff]  ;;  %v3546_v22 = vld [vmem:[%s3879_s15 + $0x20] sm:$0xff]  ;;  %v3579_v23 = vld [vmem:[%s3879_s15 + $0x128] sm:$0xff] }
  0x1f   : > { %v3608_v24 = vld [vmem:[%s3879_s15 + $0x210] sm:$0xff]  ;;  %v3641_v25 = vld [vmem:[%s3879_s15 + $0x318] sm:$0xff]  ;;  %v3547_v26 = vld [vmem:[%s3879_s15 + $0x28] sm:$0xff] }
  0x20   : > { %v3580_v27 = vld [vmem:[%s3879_s15 + $0x130] sm:$0xff]  ;;  %v3609_v28 = vld [vmem:[%s3879_s15 + $0x218] sm:$0xff]  ;;  %v3642_v29 = vld [vmem:[%s3879_s15 + $0x320] sm:$0xff] }
  0x21   : > { %1542 = vmatpush.bf16.msra.mxu0 %v3670_v5  ;;  %3678 = vmatpush.bf16.msra.mxu1 %v3670_v5  ;;  %v3548_v30 = vld [vmem:[%s3879_s15 + $0x30] sm:$0xff]  ;;  %v3581_v31 = vld [vmem:[%s3879_s15 + $0x138] sm:$0xff]  ;;  %v3610_v32 = vld [vmem:[%s3879_s15 + $0x220] sm:$0xff] }
  0x22   : > { %3679 = vmatpush.bf16.msra.mxu2 %v3670_v5  ;;  %3680 = vmatpush.bf16.msra.mxu3 %v3670_v5  ;;  %v3643_v33 = vld [vmem:[%s3879_s15 + $0x328] sm:$0xff]  ;;  %v3549_v34 = vld [vmem:[%s3879_s15 + $0x38] sm:$0xff]  ;;  %v3582_v35 = vld [vmem:[%s3879_s15 + $0x140] sm:$0xff] }
  0x23   : > { %v3611_v36 = vld [vmem:[%s3879_s15 + $0x228] sm:$0xff]  ;;  %v3644_v37 = vld [vmem:[%s3879_s15 + $0x330] sm:$0xff]  ;;  %v3550_v38 = vld [vmem:[%s3879_s15 + $0x40] sm:$0xff] }
  0x24   : > { %3410 = vmatmul.msk.bf16.vlgmr.msra.gmra.mxu0 %vm1146_vm1, %v3542_v6  ;;  %3443 = vmatmul.msk.bf16.vlgmr.msra.gmra.mxu1 %vm1146_vm1, %v3575_v7  ;;  %v3583_v39 = vld [vmem:[%s3879_s15 + $0x148] sm:$0xff]  ;;  %v3612_v42 = vld [vmem:[%s3879_s15 + $0x230] sm:$0xff]  ;;  %v3645_v43 = vld [vmem:[%s3879_s15 + $0x338] sm:$0xff] }
  0x25   : > { %3472 = vmatmul.msk.bf16.vlgmr.msra.gmra.mxu2 %vm1146_vm1, %v3604_v8  ;;  %3505 = vmatmul.msk.bf16.vlgmr.msra.gmra.mxu3 %vm1146_vm1, %v3637_v9  ;;  %v3551_v56 = vld [vmem:[%s3879_s15 + $0x48] sm:$0xff]  ;;  %v3584_v57 = vld [vmem:[%s3879_s15 + $0x150] sm:$0xff]  ;;  %v3613_v60 = vld [vmem:[%s3879_s15 + $0x238] sm:$0xff] }
  0x26   : > { %v3646_v61 = vld [vmem:[%s3879_s15 + $0x340] sm:$0xff] }
  0x34   : > { %3411 = vmatmul.msk.bf16.gmra.mxu0 %vm1146_vm1, %v3543_v10  ;;  %3444 = vmatmul.msk.bf16.gmra.mxu1 %vm1146_vm1, %v3576_v11  ;;  %v3552_v11 = vld [vmem:[%s3879_s15 + $0x50] sm:$0xff] }
  0x35   : > { %3473 = vmatmul.msk.bf16.gmra.mxu2 %vm1146_vm1, %v3605_v12  ;;  %3506 = vmatmul.msk.bf16.gmra.mxu3 %vm1146_vm1, %v3638_v13  ;;  %v3585_v12 = vld [vmem:[%s3879_s15 + $0x158] sm:$0xff] }
  0x44   : > { %3412 = vmatmul.msk.bf16.gmra.mxu0 %vm1146_vm1, %v3544_v14  ;;  %3445 = vmatmul.msk.bf16.gmra.mxu1 %vm1146_vm1, %v3577_v15 }
  0x45   : > { %3474 = vmatmul.msk.bf16.gmra.mxu2 %vm1146_vm1, %v3606_v16  ;;  %3507 = vmatmul.msk.bf16.gmra.mxu3 %vm1146_vm1, %v3639_v17  ;;  %v3614_v17 = vld [vmem:[%s3879_s15 + $0x240] sm:$0xff] }
  0x54   : > { %3413 = vmatmul.msk.bf16.gmra.mxu0 %vm1146_vm1, %v3545_v18  ;;  %3446 = vmatmul.msk.bf16.gmra.mxu1 %vm1146_vm1, %v3578_v19  ;;  %v3647_v18 = vld [vmem:[%s3879_s15 + $0x348] sm:$0xff] }
  0x55   : > { %3475 = vmatmul.msk.bf16.gmra.mxu2 %vm1146_vm1, %v3607_v20  ;;  %3508 = vmatmul.msk.bf16.gmra.mxu3 %vm1146_vm1, %v3640_v21 }
  0x64   : > { %3414 = vmatmul.msk.bf16.gmra.mxu0 %vm1146_vm1, %v3546_v22  ;;  %3447 = vmatmul.msk.bf16.gmra.mxu1 %vm1146_vm1, %v3579_v23 }
  0x65   : > { %3476 = vmatmul.msk.bf16.gmra.mxu2 %vm1146_vm1, %v3608_v24  ;;  %3509 = vmatmul.msk.bf16.gmra.mxu3 %vm1146_vm1, %v3641_v25 }
  0x74   : > { %3415 = vmatmul.msk.bf16.gmra.mxu0 %vm1146_vm1, %v3547_v26  ;;  %3448 = vmatmul.msk.bf16.gmra.mxu1 %vm1146_vm1, %v3580_v27 }
  0x75   : > { %3477 = vmatmul.msk.bf16.gmra.mxu2 %vm1146_vm1, %v3609_v28  ;;  %3510 = vmatmul.msk.bf16.gmra.mxu3 %vm1146_vm1, %v3642_v29 }
  0x84   : > { %3416 = vmatmul.msk.bf16.gmra.mxu0 %vm1146_vm1, %v3548_v30  ;;  %3449 = vmatmul.msk.bf16.gmra.mxu1 %vm1146_vm1, %v3581_v31 }
  0x85   : > { %3478 = vmatmul.msk.bf16.gmra.mxu2 %vm1146_vm1, %v3610_v32  ;;  %3511 = vmatmul.msk.bf16.gmra.mxu3 %vm1146_vm1, %v3643_v33 }
  0x94   : > { %3417 = vmatmul.msk.bf16.gmra.mxu0 %vm1146_vm1, %v3549_v34  ;;  %3450 = vmatmul.msk.bf16.gmra.mxu1 %vm1146_vm1, %v3582_v35 }
  0x95   : > { %3479 = vmatmul.msk.bf16.gmra.mxu2 %vm1146_vm1, %v3611_v36  ;;  %3512 = vmatmul.msk.bf16.gmra.mxu3 %vm1146_vm1, %v3644_v37  ;;  %v3553_v37 = vld [vmem:[%s3879_s15 + $0x58] sm:$0xff] }
  0xa1   : > { %v1544_v40 = vpop.f32.mrf.mxu0  ;;  %v3947_v41 = vpop.f32.mrf.mxu1 }
  0xa2   : > { %v1545_v45 = vadd.f32 %v3954_v44, %v1544_v40 }
  0xa4   : > { %3418 = vmatmul.msk.bf16.gmra.mxu0 %vm1146_vm1, %v3550_v38  ;;  %3451 = vmatmul.msk.bf16.gmra.mxu1 %vm1146_vm1, %v3583_v39  ;;  %v2184_v51 = vmax.f32 %v1545_v45, 0.0  ;;  %v3586_v38 = vld [vmem:[%s3879_s15 + $0x160] sm:$0xff] }
  0xa5   : > { %3480 = vmatmul.msk.bf16.gmra.mxu2 %vm1146_vm1, %v3612_v42  ;;  %3513 = vmatmul.msk.bf16.gmra.mxu3 %vm1146_vm1, %v3645_v43 }
  0xa8   : > { %v3961_v46 = vpop.f32.mrf.mxu2  ;;  %v3963_v47 = vpop.f32.mrf.mxu3 }
  0xa9   : > { %v1546_v48 = vpop.f32.mrf.mxu0  ;;  %v3965_v49 = vpop.f32.mrf.mxu1 }
  0xaa   : > { %v1547_v50 = vadd.f32 %v3954_v44, %v1546_v48  ;;  %v3615_v48 = vld [vmem:[%s3879_s15 + $0x248] sm:$0xff] }
  0xac   : > { %v2185_v52 = vmax.f32 %v1547_v50, 0.0  ;;  %v3648_v50 = vld [vmem:[%s3879_s15 + $0x350] sm:$0xff] }
  0xae   : > { %v2440_v53 = vadd.f32 %v2185_v52, %v2184_v51 }
  0xb0   : > { %v3968_v54 = vpop.f32.mrf.mxu2  ;;  %v3970_v55 = vpop.f32.mrf.mxu3 }
  0xb1   : > { %v1549_v58 = vpop.f32.mrf.mxu0  ;;  %v3974_v59 = vpop.f32.mrf.mxu1 }
  0xb2   : > { %v1550_v62 = vadd.f32 %v3954_v44, %v1549_v58 }
  0xb4   : > { %v2186_v63 = vmax.f32 %v1550_v62, 0.0  ;;  %3419 = vmatmul.msk.bf16.gmra.mxu0 %vm1146_vm1, %v3551_v56  ;;  %3452 = vmatmul.msk.bf16.gmra.mxu1 %vm1146_vm1, %v3584_v57 }
  0xb5   : > { %3481 = vmatmul.msk.bf16.gmra.mxu2 %vm1146_vm1, %v3613_v60  ;;  %3514 = vmatmul.msk.bf16.gmra.mxu3 %vm1146_vm1, %v3646_v61 }
  0xb6   : > { %v2441_v0 = vadd.f32 %v2440_v53, %v2186_v63 }
  0xb8   : > { %v3983_v1 = vpop.f32.mrf.mxu2  ;;  %v2024_v2 = vpop.f32.mrf.mxu3 }
  0xb9   : > { %v1551_v3 = vpop.f32.mrf.mxu0  ;;  %v3985_v4 = vpop.f32.mrf.mxu1  ;;  %v2025_v7 = vadd.f32 %v3954_v44, %v2024_v2 }
  0xba   : > { %v1552_v5 = vadd.f32 %v3954_v44, %v1551_v3 }
  0xbb   : > { %v2376_v13 = vmax.f32 %v2025_v7, 0.0 }
  0xbc   : > { %v2187_v6 = vmax.f32 %v1552_v5, 0.0 }
  0xbe   : > { %v2442_v8 = vadd.f32 %v2441_v0, %v2187_v6 }
  0xc0   : > { %v3989_v9 = vpop.f32.mrf.mxu2  ;;  %v2026_v10 = vpop.f32.mrf.mxu3 }
  0xc1   : > { %v2027_v14 = vadd.f32 %v3954_v44, %v2026_v10  ;;  %v1554_v15 = vpop.f32.mrf.mxu0  ;;  %v3994_v16 = vpop.f32.mrf.mxu1 }
  0xc2   : > { %v1555_v19 = vadd.f32 %v3954_v44, %v1554_v15  ;;  %v3554_v15 = vld [vmem:[%s3879_s15 + $0x60] sm:$0xff] }
  0xc3   : > { %v2377_v20 = vmax.f32 %v2027_v14, 0.0 }
  0xc4   : > { %v2188_v21 = vmax.f32 %v1555_v19, 0.0  ;;  %3420 = vmatmul.msk.bf16.gmra.mxu0 %vm1146_vm1, %v3552_v11  ;;  %3453 = vmatmul.msk.bf16.gmra.mxu1 %vm1146_vm1, %v3585_v12 }
  0xc5   : > { %v2662_v22 = vadd.f32 %v2377_v20, %v2376_v13  ;;  %3482 = vmatmul.msk.bf16.gmra.mxu2 %vm1146_vm1, %v3614_v17  ;;  %3515 = vmatmul.msk.bf16.gmra.mxu3 %vm1146_vm1, %v3647_v18  ;;  %v3587_v17 = vld [vmem:[%s3879_s15 + $0x168] sm:$0xff] }
  0xc6   : > { %v2443_v23 = vadd.f32 %v2442_v8, %v2188_v21 }
  0xc8   : > { %v1864_v24 = vpop.f32.mrf.mxu2  ;;  %v2029_v25 = vpop.f32.mrf.mxu3 }
  0xc9   : > { %v2030_v26 = vadd.f32 %v3954_v44, %v2029_v25  ;;  %v1556_v27 = vpop.f32.mrf.mxu0  ;;  %v4004_v28 = vpop.f32.mrf.mxu1  ;;  %v1865_v32 = vadd.f32 %v3954_v44, %v1864_v24 }
  0xca   : > { %v1557_v29 = vadd.f32 %v3954_v44, %v1556_v27 }
  0xcb   : > { %v2378_v30 = vmax.f32 %v2030_v26, 0.0  ;;  %v2312_v39 = vmax.f32 %v1865_v32, 0.0 }
  0xcc   : > { %v2189_v31 = vmax.f32 %v1557_v29, 0.0 }
  0xcd   : > { %v2663_v33 = vadd.f32 %v2662_v22, %v2378_v30  ;;  %v3616_v22 = vld [vmem:[%s3879_s15 + $0x250] sm:$0xff] }
  0xce   : > { %v2444_v34 = vadd.f32 %v2443_v23, %v2189_v31  ;;  %v3649_v23 = vld [vmem:[%s3879_s15 + $0x358] sm:$0xff] }
  0xd0   : > { %v1866_v35 = vpop.f32.mrf.mxu2  ;;  %v2031_v36 = vpop.f32.mrf.mxu3 }
  0xd1   : > { %v1867_v40 = vadd.f32 %v3954_v44, %v1866_v35  ;;  %v2032_v42 = vadd.f32 %v3954_v44, %v2031_v36  ;;  %v1559_v43 = vpop.f32.mrf.mxu0  ;;  %v4012_v45 = vpop.f32.mrf.mxu1 }
  0xd2   : > { %v1560_v51 = vadd.f32 %v3954_v44, %v1559_v43 }
  0xd3   : > { %v2313_v52 = vmax.f32 %v1867_v40, 0.0  ;;  %v2379_v53 = vmax.f32 %v2032_v42, 0.0 }
  0xd4   : > { %v2190_v56 = vmax.f32 %v1560_v51, 0.0  ;;  %3421 = vmatmul.msk.bf16.gmra.mxu0 %vm1146_vm1, %v3553_v37  ;;  %3454 = vmatmul.msk.bf16.gmra.mxu1 %vm1146_vm1, %v3586_v38 }
  0xd5   : > { %v2588_v57 = vadd.f32 %v2313_v52, %v2312_v39  ;;  %v2664_v58 = vadd.f32 %v2663_v33, %v2379_v53  ;;  %3483 = vmatmul.msk.bf16.gmra.mxu2 %vm1146_vm1, %v3615_v48  ;;  %3516 = vmatmul.msk.bf16.gmra.mxu3 %vm1146_vm1, %v3648_v50  ;;  %v3555_v53 = vld [vmem:[%s3879_s15 + $0x68] sm:$0xff] }
  0xd6   : > { %v2445_v60 = vadd.f32 %v2444_v34, %v2190_v56  ;;  %v3588_v56 = vld [vmem:[%s3879_s15 + $0x170] sm:$0xff] }
  0xd8   : > { %v1869_v61 = vpop.f32.mrf.mxu2  ;;  %v2034_v62 = vpop.f32.mrf.mxu3 }
  0xd9   : > { %v1870_v63 = vadd.f32 %v3954_v44, %v1869_v61  ;;  %v2035_v0 = vadd.f32 %v3954_v44, %v2034_v62  ;;  %v1561_v2 = vpop.f32.mrf.mxu0  ;;  %v4023_v3 = vpop.f32.mrf.mxu1  ;;  %v3617_v62 = vld [vmem:[%s3879_s15 + $0x258] sm:$0xff] }
  0xda   : > { %v1562_v5 = vadd.f32 %v3954_v44, %v1561_v2 }
  0xdb   : > { %v2314_v6 = vmax.f32 %v1870_v63, 0.0  ;;  %v2380_v7 = vmax.f32 %v2035_v0, 0.0  ;;  %v3650_v63 = vld [vmem:[%s3879_s15 + $0x360] sm:$0xff] }
  0xdc   : > { %v2191_v8 = vmax.f32 %v1562_v5, 0.0 }
  0xdd   : > { %v2589_v10 = vadd.f32 %v2588_v57, %v2314_v6  ;;  %v2665_v11 = vadd.f32 %v2664_v58, %v2380_v7 }
  0xde   : > { %v2446_v12 = vadd.f32 %v2445_v60, %v2191_v8 }
  0xe0   : > { %v1871_v13 = vpop.f32.mrf.mxu2  ;;  %v2036_v14 = vpop.f32.mrf.mxu3 }
  0xe1   : > { %v1872_v18 = vadd.f32 %v3954_v44, %v1871_v13  ;;  %v2037_v19 = vadd.f32 %v3954_v44, %v2036_v14  ;;  %v1564_v20 = vpop.f32.mrf.mxu0  ;;  %v4030_v21 = vpop.f32.mrf.mxu1 }
  0xe2   : > { %v1565_v24 = vadd.f32 %v3954_v44, %v1564_v20 }
  0xe3   : > { %v2315_v25 = vmax.f32 %v1872_v18, 0.0  ;;  %v2381_v26 = vmax.f32 %v2037_v19, 0.0 }
  0xe4   : > { %v2192_v27 = vmax.f32 %v1565_v24, 0.0  ;;  %3422 = vmatmul.msk.bf16.gmra.mxu0 %vm1146_vm1, %v3554_v15  ;;  %3455 = vmatmul.msk.bf16.gmra.mxu1 %vm1146_vm1, %v3587_v17 }
  0xe5   : > { %v2590_v29 = vadd.f32 %v2589_v10, %v2315_v25  ;;  %v2666_v30 = vadd.f32 %v2665_v11, %v2381_v26  ;;  %3484 = vmatmul.msk.bf16.gmra.mxu2 %vm1146_vm1, %v3616_v22  ;;  %3517 = vmatmul.msk.bf16.gmra.mxu3 %vm1146_vm1, %v3649_v23 }
  0xe6   : > { %v2447_v31 = vadd.f32 %v2446_v12, %v2192_v27 }
  0xe8   : > { %v1874_v32 = vpop.f32.mrf.mxu2  ;;  %v2039_v33 = vpop.f32.mrf.mxu3 }
  0xe9   : > { %v1875_v34 = vadd.f32 %v3954_v44, %v1874_v32  ;;  %v2040_v35 = vadd.f32 %v3954_v44, %v2039_v33  ;;  %v1566_v36 = vpop.f32.mrf.mxu0  ;;  %v4041_v37 = vpop.f32.mrf.mxu1 }
  0xea   : > { %v1567_v38 = vadd.f32 %v3954_v44, %v1566_v36  ;;  %v3651_v36 = vld [vmem:[%s3879_s15 + $0x368] sm:$0xff] }
  0xeb   : > { %v2316_v39 = vmax.f32 %v1875_v34, 0.0  ;;  %v2382_v40 = vmax.f32 %v2040_v35, 0.0  ;;  %v3618_v35 = vld [vmem:[%s3879_s15 + $0x260] sm:$0xff] }
  0xec   : > { %v2193_v42 = vmax.f32 %v1567_v38, 0.0 }
  0xed   : > { %v2591_v43 = vadd.f32 %v2590_v29, %v2316_v39  ;;  %v2667_v48 = vadd.f32 %v2666_v30, %v2382_v40  ;;  %v3556_v29 = vld [vmem:[%s3879_s15 + $0x70] sm:$0xff]  ;;  %v3589_v30 = vld [vmem:[%s3879_s15 + $0x178] sm:$0xff] }
  0xee   : > { %v2448_v50 = vadd.f32 %v2447_v31, %v2193_v42 }
  0xf0   : > { %v1876_v51 = vpop.f32.mrf.mxu2  ;;  %v2041_v52 = vpop.f32.mrf.mxu3 }
  0xf1   : > { %v1877_v57 = vadd.f32 %v3954_v44, %v1876_v51  ;;  %v2042_v58 = vadd.f32 %v3954_v44, %v2041_v52  ;;  %v1569_v60 = vpop.f32.mrf.mxu0  ;;  %v4048_v61 = vpop.f32.mrf.mxu1 }
  0xf2   : > { %v1570_v0 = vadd.f32 %v3954_v44, %v1569_v60 }
  0xf3   : > { %v2317_v2 = vmax.f32 %v1877_v57, 0.0  ;;  %v2383_v5 = vmax.f32 %v2042_v58, 0.0 }
  0xf4   : > { %v2194_v6 = vmax.f32 %v1570_v0, 0.0  ;;  %3423 = vmatmul.msk.bf16.gmra.mxu0 %vm1146_vm1, %v3555_v53  ;;  %3456 = vmatmul.msk.bf16.gmra.mxu1 %vm1146_vm1, %v3588_v56 }
  0xf5   : > { %v2592_v7 = vadd.f32 %v2591_v43, %v2317_v2  ;;  %v2668_v8 = vadd.f32 %v2667_v48, %v2383_v5  ;;  %3485 = vmatmul.msk.bf16.gmra.mxu2 %vm1146_vm1, %v3617_v62  ;;  %3518 = vmatmul.msk.bf16.gmra.mxu3 %vm1146_vm1, %v3650_v63 }
  0xf6   : > { %v2449_v10 = vadd.f32 %v2448_v50, %v2194_v6 }
  0xf8   : > { %v1879_v11 = vpop.f32.mrf.mxu2  ;;  %v2044_v12 = vpop.f32.mrf.mxu3 }
  0xf9   : > { %v1880_v13 = vadd.f32 %v3954_v44, %v1879_v11  ;;  %v2045_v14 = vadd.f32 %v3954_v44, %v2044_v12  ;;  %v1571_v15 = vpop.f32.mrf.mxu0  ;;  %v4059_v17 = vpop.f32.mrf.mxu1  ;;  %v3590_v11 = vld [vmem:[%s3879_s15 + $0x180] sm:$0xff] }
  0xfa   : > { %v1572_v18 = vadd.f32 %v3954_v44, %v1571_v15 }
  0xfb   : > { %v2318_v19 = vmax.f32 %v1880_v13, 0.0  ;;  %v2384_v20 = vmax.f32 %v2045_v14, 0.0 }
  0xfc   : > { %v2195_v22 = vmax.f32 %v1572_v18, 0.0  ;;  %v3619_v18 = vld [vmem:[%s3879_s15 + $0x268] sm:$0xff] }
  0xfd   : > { %v2593_v23 = vadd.f32 %v2592_v7, %v2318_v19  ;;  %v2669_v24 = vadd.f32 %v2668_v8, %v2384_v20  ;;  %v3652_v19 = vld [vmem:[%s3879_s15 + $0x370] sm:$0xff] }
  0xfe   : > { %v2450_v25 = vadd.f32 %v2449_v10, %v2195_v22  ;;  %v3557_v10 = vld [vmem:[%s3879_s15 + $0x78] sm:$0xff] }
 0x100   : > { %v1881_v26 = vpop.f32.mrf.mxu2  ;;  %v2046_v27 = vpop.f32.mrf.mxu3 }
 0x101   : > { %v1882_v31 = vadd.f32 %v3954_v44, %v1881_v26  ;;  %v2047_v32 = vadd.f32 %v3954_v44, %v2046_v27  ;;  %v1574_v33 = vpop.f32.mrf.mxu0  ;;  %v4066_v34 = vpop.f32.mrf.mxu1  ;;  %v2759_v27 = vld [vmem:[%s4673_s3 + $0x78] sm:$0xff] }
 0x102   : > { %v1575_v38 = vadd.f32 %v3954_v44, %v1574_v33  ;;  %2787 = vmatpush.msrb.mxu1 %v2759_v27 }
 0x103   : > { %v2319_v39 = vmax.f32 %v1882_v31, 0.0  ;;  %v2385_v40 = vmax.f32 %v2047_v32, 0.0 }
 0x104   : > { %v2196_v42 = vmax.f32 %v1575_v38, 0.0  ;;  %3424 = vmatmul.msk.bf16.gmra.mxu0 %vm1146_vm1, %v3556_v29  ;;  %3457 = vmatmul.msk.bf16.gmra.mxu1 %vm1146_vm1, %v3589_v30 }
 0x105   : > { %v2594_v43 = vadd.f32 %v2593_v23, %v2319_v39  ;;  %v2670_v48 = vadd.f32 %v2669_v24, %v2385_v40  ;;  %3486 = vmatmul.msk.bf16.gmra.mxu2 %vm1146_vm1, %v3618_v35  ;;  %3519 = vmatmul.msk.bf16.gmra.mxu3 %vm1146_vm1, %v3651_v36 }
 0x106   : > { %v2451_v50 = vadd.f32 %v2450_v25, %v2196_v42 }
 0x108   : > { %v1884_v51 = vpop.f32.mrf.mxu2  ;;  %v2049_v52 = vpop.f32.mrf.mxu3 }
 0x109   : > { %v1885_v53 = vadd.f32 %v3954_v44, %v1884_v51  ;;  %v2050_v56 = vadd.f32 %v3954_v44, %v2049_v52  ;;  %v1576_v57 = vpop.f32.mrf.mxu0  ;;  %v4077_v58 = vpop.f32.mrf.mxu1 }
 0x10a   : > { %v1577_v60 = vadd.f32 %v3954_v44, %v1576_v57 }
 0x10b   : > { %v2320_v62 = vmax.f32 %v1885_v53, 0.0  ;;  %v2386_v63 = vmax.f32 %v2050_v56, 0.0  ;;  %v3558_v53 = vld [vmem:[%s3879_s15 + $0x80] sm:$0xff]  ;;  %v3591_v56 = vld [vmem:[%s3879_s15 + $0x188] sm:$0xff] }
 0x10c   : > { %v2197_v0 = vmax.f32 %v1577_v60, 0.0 }
 0x10d   : > { %v2595_v2 = vadd.f32 %v2594_v43, %v2320_v62  ;;  %v2671_v5 = vadd.f32 %v2670_v48, %v2386_v63 }
 0x10e   : > { %v2452_v6 = vadd.f32 %v2451_v50, %v2197_v0  ;;  %v3620_v0 = vld [vmem:[%s3879_s15 + $0x270] sm:$0xff] }
 0x110   : > { %v1886_v7 = vpop.f32.mrf.mxu2  ;;  %v2051_v8 = vpop.f32.mrf.mxu3 }
 0x111   : > { %v1887_v12 = vadd.f32 %v3954_v44, %v1886_v7  ;;  %v2052_v13 = vadd.f32 %v3954_v44, %v2051_v8  ;;  %v1579_v14 = vpop.f32.mrf.mxu0  ;;  %v4084_v15 = vpop.f32.mrf.mxu1 }
 0x112   : > { %v1580_v20 = vadd.f32 %v3954_v44, %v1579_v14 }
 0x113   : > { %v2321_v22 = vmax.f32 %v1887_v12, 0.0  ;;  %v2387_v23 = vmax.f32 %v2052_v13, 0.0 }
 0x114   : > { %v2198_v24 = vmax.f32 %v1580_v20, 0.0  ;;  %3425 = vmatmul.msk.bf16.gmra.mxu0 %vm1146_vm1, %v3557_v10  ;;  %3458 = vmatmul.msk.bf16.gmra.mxu1 %vm1146_vm1, %v3590_v11 }
 0x115   : > { %v2596_v25 = vadd.f32 %v2595_v2, %v2321_v22  ;;  %v2672_v26 = vadd.f32 %v2671_v5, %v2387_v23  ;;  %3487 = vmatmul.msk.bf16.gmra.mxu2 %vm1146_vm1, %v3619_v18  ;;  %3520 = vmatmul.msk.bf16.gmra.mxu3 %vm1146_vm1, %v3652_v19  ;;  %v3653_v2 = vld [vmem:[%s3879_s15 + $0x378] sm:$0xff] }
 0x116   : > { %v2453_v29 = vadd.f32 %v2452_v6, %v2198_v24 }
 0x118   : > { %v1889_v30 = vpop.f32.mrf.mxu2  ;;  %v2054_v31 = vpop.f32.mrf.mxu3 }
 0x119   : > { %v1890_v32 = vadd.f32 %v3954_v44, %v1889_v30  ;;  %v2055_v33 = vadd.f32 %v3954_v44, %v2054_v31  ;;  %v1581_v35 = vpop.f32.mrf.mxu0  ;;  %v4098_v36 = vpop.f32.mrf.mxu1  ;;  %v2758_v31 = vld [vmem:[%s4673_s3 + $0x70] sm:$0xff] }
 0x11a   : > { %v1582_v38 = vadd.f32 %v3954_v44, %v1581_v35  ;;  %2788 = vmatpush.msrb.mxu1 %v2758_v31  ;;  %v3559_v35 = vld [vmem:[%s3879_s15 + $0x88] sm:$0xff]  ;;  %v3622_v31 = vld [vmem:[%s3879_s15 + $0x280] sm:$0xff] }
 0x11b   : > { %v2322_v39 = vmax.f32 %v1890_v32, 0.0  ;;  %v2388_v40 = vmax.f32 %v2055_v33, 0.0 }
 0x11c   : > { %v2199_v42 = vmax.f32 %v1582_v38, 0.0  ;;  %v3592_v38 = vld [vmem:[%s3879_s15 + $0x190] sm:$0xff] }
 0x11d   : > { %v2597_v43 = vadd.f32 %v2596_v25, %v2322_v39  ;;  %v2673_v48 = vadd.f32 %v2672_v26, %v2388_v40 }
 0x11e   : > { %v2454_v50 = vadd.f32 %v2453_v29, %v2199_v42 }
 0x120   : > { %v1891_v51 = vpop.f32.mrf.mxu2  ;;  %v2056_v52 = vpop.f32.mrf.mxu3 }
 0x121   : > { %v1892_v57 = vadd.f32 %v3954_v44, %v1891_v51  ;;  %v2057_v60 = vadd.f32 %v3954_v44, %v2056_v52  ;;  %v1584_v62 = vpop.f32.mrf.mxu0  ;;  %v4105_v63 = vpop.f32.mrf.mxu1 }
 0x122   : > { %v1585_v5 = vadd.f32 %v3954_v44, %v1584_v62 }
 0x123   : > { %v2323_v6 = vmax.f32 %v1892_v57, 0.0  ;;  %v2389_v7 = vmax.f32 %v2057_v60, 0.0 }
 0x124   : > { %v2200_v8 = vmax.f32 %v1585_v5, 0.0  ;;  %3426 = vmatmul.msk.bf16.gmra.mxu0 %vm1146_vm1, %v3558_v53  ;;  %3459 = vmatmul.msk.bf16.gmra.mxu1 %vm1146_vm1, %v3591_v56 }
 0x125   : > { %v2598_v10 = vadd.f32 %v2597_v43, %v2323_v6  ;;  %v2674_v11 = vadd.f32 %v2673_v48, %v2389_v7  ;;  %3488 = vmatmul.msk.bf16.gmra.mxu2 %vm1146_vm1, %v3620_v0  ;;  %3521 = vmatmul.msk.bf16.gmra.mxu3 %vm1146_vm1, %v3653_v2  ;;  %v3621_v48 = vld [vmem:[%s3879_s15 + $0x278] sm:$0xff] }
 0x126   : > { %v2455_v12 = vadd.f32 %v2454_v50, %v2200_v8  ;;  %v3654_v50 = vld [vmem:[%s3879_s15 + $0x380] sm:$0xff] }
 0x128   : > { %v1894_v13 = vpop.f32.mrf.mxu2  ;;  %v2059_v14 = vpop.f32.mrf.mxu3 }
 0x129   : > { %v1895_v18 = vadd.f32 %v3954_v44, %v1894_v13  ;;  %v2060_v19 = vadd.f32 %v3954_v44, %v2059_v14  ;;  %v1586_v20 = vpop.f32.mrf.mxu0  ;;  %v4116_v22 = vpop.f32.mrf.mxu1 }
 0x12a   : > { %v1587_v23 = vadd.f32 %v3954_v44, %v1586_v20 }
 0x12b   : > { %v2324_v24 = vmax.f32 %v1895_v18, 0.0  ;;  %v2390_v25 = vmax.f32 %v2060_v19, 0.0 }
 0x12c   : > { %v2201_v26 = vmax.f32 %v1587_v23, 0.0 }
 0x12d   : > { %v2599_v27 = vadd.f32 %v2598_v10, %v2324_v24  ;;  %v2675_v29 = vadd.f32 %v2674_v11, %v2390_v25  ;;  %v3560_v24 = vld [vmem:[%s3879_s15 + $0x90] sm:$0xff]  ;;  %v3593_v25 = vld [vmem:[%s3879_s15 + $0x198] sm:$0xff] }
 0x12e   : > { %v2456_v30 = vadd.f32 %v2455_v12, %v2201_v26 }
 0x130   : > { %v1896_v32 = vpop.f32.mrf.mxu2  ;;  %v2061_v33 = vpop.f32.mrf.mxu3 }
 0x131   : > { %v1897_v39 = vadd.f32 %v3954_v44, %v1896_v32  ;;  %v2062_v40 = vadd.f32 %v3954_v44, %v2061_v33  ;;  %v1589_v42 = vpop.f32.mrf.mxu0  ;;  %v4126_v43 = vpop.f32.mrf.mxu1  ;;  %v3655_v32 = vld [vmem:[%s3879_s15 + $0x388] sm:$0xff] }
 0x132   : > { %v1590_v51 = vadd.f32 %v3954_v44, %v1589_v42 }
 0x133   : > { %v2325_v52 = vmax.f32 %v1897_v39, 0.0  ;;  %v2391_v53 = vmax.f32 %v2062_v40, 0.0 }
 0x134   : > { %v2202_v56 = vmax.f32 %v1590_v51, 0.0  ;;  %3427 = vmatmul.msk.bf16.gmra.mxu0 %vm1146_vm1, %v3559_v35  ;;  %3460 = vmatmul.msk.bf16.gmra.mxu1 %vm1146_vm1, %v3592_v38 }
 0x135   : > { %v2600_v57 = vadd.f32 %v2599_v27, %v2325_v52  ;;  %v2676_v60 = vadd.f32 %v2675_v29, %v2391_v53  ;;  %3489 = vmatmul.msk.bf16.gmra.mxu2 %vm1146_vm1, %v3621_v48  ;;  %3522 = vmatmul.msk.bf16.gmra.mxu3 %vm1146_vm1, %v3654_v50 }
 0x136   : > { %v2457_v62 = vadd.f32 %v2456_v30, %v2202_v56 }
 0x138   : > { %v1899_v0 = vpop.f32.mrf.mxu2  ;;  %v2064_v2 = vpop.f32.mrf.mxu3 }
 0x139   : > { %v1900_v5 = vadd.f32 %v3954_v44, %v1899_v0  ;;  %v2065_v6 = vadd.f32 %v3954_v44, %v2064_v2  ;;  %v1591_v7 = vpop.f32.mrf.mxu0  ;;  %v4137_v8 = vpop.f32.mrf.mxu1 }
 0x13a   : > { %v1592_v10 = vadd.f32 %v3954_v44, %v1591_v7 }
 0x13b   : > { %v2326_v11 = vmax.f32 %v1900_v5, 0.0  ;;  %v2392_v12 = vmax.f32 %v2065_v6, 0.0 }
 0x13c   : > { %v2203_v13 = vmax.f32 %v1592_v10, 0.0  ;;  %v2757_v10 = vld [vmem:[%s4673_s3 + $0x68] sm:$0xff] }
 0x13d   : > { %v2601_v14 = vadd.f32 %v2600_v57, %v2326_v11  ;;  %v2677_v18 = vadd.f32 %v2676_v60, %v2392_v12  ;;  %2789 = vmatpush.msrb.mxu1 %v2757_v10 }
 0x13e   : > { %v2458_v19 = vadd.f32 %v2457_v62, %v2203_v13  ;;  %v3561_v13 = vld [vmem:[%s3879_s15 + $0x98] sm:$0xff] }
 0x140   : > { %v1901_v20 = vpop.f32.mrf.mxu2  ;;  %v2066_v23 = vpop.f32.mrf.mxu3 }
 0x141   : > { %v1902_v26 = vadd.f32 %v3954_v44, %v1901_v20  ;;  %v2067_v27 = vadd.f32 %v3954_v44, %v2066_v23  ;;  %v1594_v29 = vpop.f32.mrf.mxu0  ;;  %v4144_v30 = vpop.f32.mrf.mxu1 }
 0x142   : > { %v1595_v33 = vadd.f32 %v3954_v44, %v1594_v29 }
 0x143   : > { %v2327_v35 = vmax.f32 %v1902_v26, 0.0  ;;  %v2393_v38 = vmax.f32 %v2067_v27, 0.0 }
 0x144   : > { %v2204_v39 = vmax.f32 %v1595_v33, 0.0  ;;  %3428 = vmatmul.msk.bf16.gmra.mxu0 %vm1146_vm1, %v3560_v24  ;;  %3461 = vmatmul.msk.bf16.gmra.mxu1 %vm1146_vm1, %v3593_v25  ;;  %v3623_v24 = vld [vmem:[%s3879_s15 + $0x288] sm:$0xff]  ;;  %v3656_v25 = vld [vmem:[%s3879_s15 + $0x390] sm:$0xff] }
 0x145   : > { %v2602_v40 = vadd.f32 %v2601_v14, %v2327_v35  ;;  %v2678_v42 = vadd.f32 %v2677_v18, %v2393_v38  ;;  %3490 = vmatmul.msk.bf16.gmra.mxu2 %vm1146_vm1, %v3622_v31  ;;  %3523 = vmatmul.msk.bf16.gmra.mxu3 %vm1146_vm1, %v3655_v32  ;;  %v3594_v14 = vld [vmem:[%s3879_s15 + $0x1a0] sm:$0xff] }
 0x146   : > { %v2459_v48 = vadd.f32 %v2458_v19, %v2204_v39 }
 0x148   : > { %v1904_v50 = vpop.f32.mrf.mxu2  ;;  %v2069_v51 = vpop.f32.mrf.mxu3 }
 0x149   : > { %v1905_v52 = vadd.f32 %v3954_v44, %v1904_v50  ;;  %v2070_v53 = vadd.f32 %v3954_v44, %v2069_v51  ;;  %v1596_v56 = vpop.f32.mrf.mxu0  ;;  %v4155_v57 = vpop.f32.mrf.mxu1 }
 0x14a   : > { %v1597_v60 = vadd.f32 %v3954_v44, %v1596_v56 }
 0x14b   : > { %v2328_v62 = vmax.f32 %v1905_v52, 0.0  ;;  %v2394_v0 = vmax.f32 %v2070_v53, 0.0 }
 0x14c   : > { %v2205_v2 = vmax.f32 %v1597_v60, 0.0 }
 0x14d   : > { %v2603_v5 = vadd.f32 %v2602_v40, %v2328_v62  ;;  %v2679_v6 = vadd.f32 %v2678_v42, %v2394_v0 }
 0x14e   : > { %v2460_v7 = vadd.f32 %v2459_v48, %v2205_v2 }
 0x150   : > { %v1906_v11 = vpop.f32.mrf.mxu2  ;;  %v2071_v12 = vpop.f32.mrf.mxu3 }
 0x151   : > { %v1907_v18 = vadd.f32 %v3954_v44, %v1906_v11  ;;  %v2072_v19 = vadd.f32 %v3954_v44, %v2071_v12  ;;  %v1599_v20 = vpop.f32.mrf.mxu0  ;;  %v4165_v23 = vpop.f32.mrf.mxu1 }
 0x152   : > { %v1600_v26 = vadd.f32 %v3954_v44, %v1599_v20 }
 0x153   : > { %v2329_v27 = vmax.f32 %v1907_v18, 0.0  ;;  %v2395_v29 = vmax.f32 %v2072_v19, 0.0  ;;  %v3657_v18 = vld [vmem:[%s3879_s15 + $0x398] sm:$0xff] }
 0x154   : > { %v2206_v31 = vmax.f32 %v1600_v26, 0.0  ;;  %3429 = vmatmul.msk.bf16.gmra.mxu0 %vm1146_vm1, %v3561_v13  ;;  %3462 = vmatmul.msk.bf16.gmra.mxu1 %vm1146_vm1, %v3594_v14  ;;  %v3624_v14 = vld [vmem:[%s3879_s15 + $0x290] sm:$0xff] }
 0x155   : > { %v2604_v32 = vadd.f32 %v2603_v5, %v2329_v27  ;;  %v2680_v33 = vadd.f32 %v2679_v6, %v2395_v29  ;;  %3491 = vmatmul.msk.bf16.gmra.mxu2 %vm1146_vm1, %v3623_v24  ;;  %3524 = vmatmul.msk.bf16.gmra.mxu3 %vm1146_vm1, %v3656_v25  ;;  %v3562_v6 = vld [vmem:[%s3879_s15 + $0xa0] sm:$0xff] }
 0x156   : > { %v2461_v35 = vadd.f32 %v2460_v7, %v2206_v31  ;;  %v3595_v7 = vld [vmem:[%s3879_s15 + $0x1a8] sm:$0xff] }
 0x158   : > { %v1909_v38 = vpop.f32.mrf.mxu2  ;;  %v2074_v39 = vpop.f32.mrf.mxu3 }
 0x159   : > { %v1910_v40 = vadd.f32 %v3954_v44, %v1909_v38  ;;  %v2075_v42 = vadd.f32 %v3954_v44, %v2074_v39  ;;  %v1601_v48 = vpop.f32.mrf.mxu0  ;;  %v4176_v50 = vpop.f32.mrf.mxu1 }
 0x15a   : > { %v1602_v51 = vadd.f32 %v3954_v44, %v1601_v48 }
 0x15b   : > { %v2330_v52 = vmax.f32 %v1910_v40, 0.0  ;;  %v2396_v53 = vmax.f32 %v2075_v42, 0.0 }
 0x15c   : > { %v2207_v56 = vmax.f32 %v1602_v51, 0.0 }
 0x15d   : > { %v2605_v60 = vadd.f32 %v2604_v32, %v2330_v52  ;;  %v2681_v62 = vadd.f32 %v2680_v33, %v2396_v53 }
 0x15e   : > { %v2462_v0 = vadd.f32 %v2461_v35, %v2207_v56  ;;  %v2756_v56 = vld [vmem:[%s4673_s3 + $0x60] sm:$0xff] }
 0x15f   : > { %2790 = vmatpush.msrb.mxu1 %v2756_v56 }
 0x160   : > { %v1911_v2 = vpop.f32.mrf.mxu2  ;;  %v2076_v5 = vpop.f32.mrf.mxu3 }
 0x161   : > { %v1912_v10 = vadd.f32 %v3954_v44, %v1911_v2  ;;  %v2077_v11 = vadd.f32 %v3954_v44, %v2076_v5  ;;  %v1604_v12 = vpop.f32.mrf.mxu0  ;;  %v4183_v13 = vpop.f32.mrf.mxu1  ;;  %v3563_v2 = vld [vmem:[%s3879_s15 + $0xa8] sm:$0xff]  ;;  %v3596_v5 = vld [vmem:[%s3879_s15 + $0x1b0] sm:$0xff] }
 0x162   : > { %v1605_v19 = vadd.f32 %v3954_v44, %v1604_v12  ;;  %v3625_v12 = vld [vmem:[%s3879_s15 + $0x298] sm:$0xff] }
 0x163   : > { %v2331_v20 = vmax.f32 %v1912_v10, 0.0  ;;  %v2397_v24 = vmax.f32 %v2077_v11, 0.0 }
 0x164   : > { %v2208_v25 = vmax.f32 %v1605_v19, 0.0  ;;  %3430 = vmatmul.msk.bf16.gmra.mxu0 %vm1146_vm1, %v3562_v6  ;;  %3463 = vmatmul.msk.bf16.gmra.mxu1 %vm1146_vm1, %v3595_v7 }
 0x165   : > { %v2606_v26 = vadd.f32 %v2605_v60, %v2331_v20  ;;  %v2682_v27 = vadd.f32 %v2681_v62, %v2397_v24  ;;  %3492 = vmatmul.msk.bf16.gmra.mxu2 %vm1146_vm1, %v3624_v14  ;;  %3525 = vmatmul.msk.bf16.gmra.mxu3 %vm1146_vm1, %v3657_v18  ;;  %v3658_v14 = vld [vmem:[%s3879_s15 + $0x3a0] sm:$0xff] }
 0x166   : > { %v2463_v29 = vadd.f32 %v2462_v0, %v2208_v25 }
 0x168   : > { %v1914_v31 = vpop.f32.mrf.mxu2  ;;  %v2079_v32 = vpop.f32.mrf.mxu3 }
 0x169   : > { %v1915_v33 = vadd.f32 %v3954_v44, %v1914_v31  ;;  %v2080_v35 = vadd.f32 %v3954_v44, %v2079_v32  ;;  %v1606_v38 = vpop.f32.mrf.mxu0  ;;  %v4194_v39 = vpop.f32.mrf.mxu1 }
 0x16a   : > { %v1607_v40 = vadd.f32 %v3954_v44, %v1606_v38 }
 0x16b   : > { %v2332_v42 = vmax.f32 %v1915_v33, 0.0  ;;  %v2398_v48 = vmax.f32 %v2080_v35, 0.0 }
 0x16c   : > { %v2209_v51 = vmax.f32 %v1607_v40, 0.0 }
 0x16d   : > { %v2607_v52 = vadd.f32 %v2606_v26, %v2332_v42  ;;  %v2683_v53 = vadd.f32 %v2682_v27, %v2398_v48 }
 0x16e   : > { %v2464_v60 = vadd.f32 %v2463_v29, %v2209_v51 }
 0x170   : > { %v1916_v62 = vpop.f32.mrf.mxu2  ;;  %v2081_v0 = vpop.f32.mrf.mxu3 }
 0x171   : > { %v1917_v6 = vadd.f32 %v3954_v44, %v1916_v62  ;;  %v2082_v7 = vadd.f32 %v3954_v44, %v2081_v0  ;;  %v1609_v10 = vpop.f32.mrf.mxu0  ;;  %v4204_v11 = vpop.f32.mrf.mxu1  ;;  %v3564_v0 = vld [vmem:[%s3879_s15 + $0xb0] sm:$0xff] }
 0x172   : > { %4681 = vst [vmem:[#allocation5_spill] sm:$0xff] %v4204_v11  ;;  %v1610_v18 = vadd.f32 %v3954_v44, %v1609_v10 }
 0x173   : > { %v2333_v19 = vmax.f32 %v1917_v6, 0.0  ;;  %v2399_v20 = vmax.f32 %v2082_v7, 0.0 }
 0x174   : > { %v2210_v24 = vmax.f32 %v1610_v18, 0.0  ;;  %3431 = vmatmul.msk.bf16.gmra.mxu0 %vm1146_vm1, %v3563_v2  ;;  %3464 = vmatmul.msk.bf16.gmra.mxu1 %vm1146_vm1, %v3596_v5  ;;  %v3597_v2 = vld [vmem:[%s3879_s15 + $0x1b8] sm:$0xff] }
 0x175   : > { %v2608_v25 = vadd.f32 %v2607_v52, %v2333_v19  ;;  %v2684_v26 = vadd.f32 %v2683_v53, %v2399_v20  ;;  %3493 = vmatmul.msk.bf16.gmra.mxu2 %vm1146_vm1, %v3625_v12  ;;  %3526 = vmatmul.msk.bf16.gmra.mxu3 %vm1146_vm1, %v3658_v14  ;;  %v3626_v12 = vld [vmem:[%s3879_s15 + $0x2a0] sm:$0xff]  ;;  %v3659_v14 = vld [vmem:[%s3879_s15 + $0x3a8] sm:$0xff] }
 0x176   : > { %v2465_v27 = vadd.f32 %v2464_v60, %v2210_v24 }
 0x178   : > { %v1919_v29 = vpop.f32.mrf.mxu2  ;;  %v2084_v31 = vpop.f32.mrf.mxu3 }
 0x179   : > { %v1920_v32 = vadd.f32 %v3954_v44, %v1919_v29  ;;  %v2085_v33 = vadd.f32 %v3954_v44, %v2084_v31  ;;  %v1611_v35 = vpop.f32.mrf.mxu0  ;;  %v4215_v38 = vpop.f32.mrf.mxu1 }
 0x17a   : > { %4682 = vst [vmem:[#allocation6_spill] sm:$0xff] %v4215_v38  ;;  %v1612_v40 = vadd.f32 %v3954_v44, %v1611_v35 }
 0x17b   : > { %v2334_v42 = vmax.f32 %v1920_v32, 0.0  ;;  %v2400_v48 = vmax.f32 %v2085_v33, 0.0 }
 0x17c   : > { %v2211_v51 = vmax.f32 %v1612_v40, 0.0 }
 0x17d   : > { %v2609_v52 = vadd.f32 %v2608_v25, %v2334_v42  ;;  %v2685_v53 = vadd.f32 %v2684_v26, %v2400_v48 }
 0x17e   : > { %v2466_v56 = vadd.f32 %v2465_v27, %v2211_v51 }
 0x180   : > { %v1921_v60 = vpop.f32.mrf.mxu2  ;;  %v2086_v62 = vpop.f32.mrf.mxu3 }
 0x181   : > { %v1922_v5 = vadd.f32 %v3954_v44, %v1921_v60  ;;  %v2087_v6 = vadd.f32 %v3954_v44, %v2086_v62  ;;  %v1614_v7 = vpop.f32.mrf.mxu0  ;;  %v4222_v10 = vpop.f32.mrf.mxu1 }
 0x182   : > { %4683 = vst [vmem:[#allocation7_spill] sm:$0xff] %v4222_v10  ;;  %v1615_v18 = vadd.f32 %v3954_v44, %v1614_v7 }
 0x183   : > { %v2335_v19 = vmax.f32 %v1922_v5, 0.0  ;;  %v2401_v20 = vmax.f32 %v2087_v6, 0.0  ;;  %v3565_v5 = vld [vmem:[%s3879_s15 + $0xb8] sm:$0xff]  ;;  %v3598_v6 = vld [vmem:[%s3879_s15 + $0x1c0] sm:$0xff] }
 0x184   : > { %v2212_v24 = vmax.f32 %v1615_v18, 0.0  ;;  %3432 = vmatmul.msk.bf16.gmra.mxu0 %vm1146_vm1, %v3564_v0  ;;  %3465 = vmatmul.msk.bf16.gmra.mxu1 %vm1146_vm1, %v3597_v2 }
 0x185   : > { %v2610_v25 = vadd.f32 %v2609_v52, %v2335_v19  ;;  %v2686_v26 = vadd.f32 %v2685_v53, %v2401_v20  ;;  %3494 = vmatmul.msk.bf16.gmra.mxu2 %vm1146_vm1, %v3626_v12  ;;  %3527 = vmatmul.msk.bf16.gmra.mxu3 %vm1146_vm1, %v3659_v14  ;;  %v2755_v53 = vld [vmem:[%s4673_s3 + $0x58] sm:$0xff]  ;;  %v3627_v19 = vld [vmem:[%s3879_s15 + $0x2a8] sm:$0xff]  ;;  %v3660_v20 = vld [vmem:[%s3879_s15 + $0x3b0] sm:$0xff] }
 0x186   : > { %v2467_v27 = vadd.f32 %v2466_v56, %v2212_v24  ;;  %2791 = vmatpush.msrb.mxu1 %v2755_v53 }
 0x188   : > { %v1924_v29 = vpop.f32.mrf.mxu2  ;;  %v2089_v31 = vpop.f32.mrf.mxu3 }
 0x189   : > { %v1925_v32 = vadd.f32 %v3954_v44, %v1924_v29  ;;  %v2090_v33 = vadd.f32 %v3954_v44, %v2089_v31  ;;  %v1616_v35 = vpop.f32.mrf.mxu0  ;;  %v4233_v40 = vpop.f32.mrf.mxu1 }
 0x18a   : > { %4684 = vst [vmem:[#allocation8_spill] sm:$0xff] %v4233_v40  ;;  %v1617_v42 = vadd.f32 %v3954_v44, %v1616_v35 }
 0x18b   : > { %v2336_v48 = vmax.f32 %v1925_v32, 0.0  ;;  %v2402_v51 = vmax.f32 %v2090_v33, 0.0 }
 0x18c   : > { %v2213_v52 = vmax.f32 %v1617_v42, 0.0 }
 0x18d   : > { %v2611_v56 = vadd.f32 %v2610_v25, %v2336_v48  ;;  %v2687_v60 = vadd.f32 %v2686_v26, %v2402_v51 }
 0x18e   : > { %v2468_v62 = vadd.f32 %v2467_v27, %v2213_v52 }
 0x190   : > { %v1926_v0 = vpop.f32.mrf.mxu2  ;;  %v2091_v2 = vpop.f32.mrf.mxu3 }
 0x191   : > { %v1927_v7 = vadd.f32 %v3954_v44, %v1926_v0  ;;  %v2092_v12 = vadd.f32 %v3954_v44, %v2091_v2  ;;  %v1619_v14 = vpop.f32.mrf.mxu0  ;;  %v1784_v18 = vpop.f32.mrf.mxu1 }
 0x192   : > { %v1620_v24 = vadd.f32 %v3954_v44, %v1619_v14  ;;  %v1785_v33 = vadd.f32 %v3954_v44, %v1784_v18 }
 0x193   : > { %v2337_v29 = vmax.f32 %v1927_v7, 0.0  ;;  %v2403_v31 = vmax.f32 %v2092_v12, 0.0 }
 0x194   : > { %v2214_v25 = vmax.f32 %v1620_v24, 0.0  ;;  %3433 = vmatmul.msk.bf16.gmra.mxu0 %vm1146_vm1, %v3565_v5  ;;  %3466 = vmatmul.msk.bf16.gmra.mxu1 %vm1146_vm1, %v3598_v6  ;;  %v2280_v0 = vmax.f32 %v1785_v33, 0.0  ;;  %v3566_v24 = vld [vmem:[%s3879_s15 + $0xc0] sm:$0xff] }
 0x195   : > { %v2612_v26 = vadd.f32 %v2611_v56, %v2337_v29  ;;  %v2688_v27 = vadd.f32 %v2687_v60, %v2403_v31  ;;  %3495 = vmatmul.msk.bf16.gmra.mxu2 %vm1146_vm1, %v3627_v19  ;;  %3528 = vmatmul.msk.bf16.gmra.mxu3 %vm1146_vm1, %v3660_v20  ;;  %v4256_v56 = vld [vmem:[%s4672_s2] ss:$0 sm:$0xff]  ;;  %v3599_v29 = vld [vmem:[%s3879_s15 + $0x1c8] sm:$0xff] }
 0x196   : > { %v2469_v32 = vadd.f32 %v2468_v62, %v2214_v25 }
 0x198   : > { %v1929_v35 = vpop.f32.mrf.mxu2  ;;  %v2094_v42 = vpop.f32.mrf.mxu3 }
 0x199   : > { %v1930_v48 = vadd.f32 %v3954_v44, %v1929_v35  ;;  %v2095_v51 = vadd.f32 %v3954_v44, %v2094_v42  ;;  %v1621_v52 = vpop.f32.mrf.mxu0  ;;  %v1786_v53 = vpop.f32.mrf.mxu1  ;;  %v3628_v42 = vld [vmem:[%s3879_s15 + $0x2b0] sm:$0xff] }
 0x19a   : > { %v1622_v60 = vadd.f32 %v4256_v56, %v1621_v52  ;;  %v1787_v62 = vadd.f32 %v4256_v56, %v1786_v53 }
 0x19b   : > { %v2338_v2 = vmax.f32 %v1930_v48, 0.0  ;;  %v2404_v5 = vmax.f32 %v2095_v51, 0.0  ;;  %v3661_v48 = vld [vmem:[%s3879_s15 + $0x3b8] sm:$0xff] }
 0x19c   : > { %v2215_v6 = vmax.f32 %v1622_v60, 0.0  ;;  %v2281_v44 = vmax.f32 %v1787_v62, 0.0 }
 0x19d   : > { %v2613_v7 = vadd.f32 %v2612_v26, %v2338_v2  ;;  %v2689_v12 = vadd.f32 %v2688_v27, %v2404_v5 }
 0x19e   : > { %v4260_v14 = vadd.f32 %v2469_v32, %v2215_v6  ;;  %v2551_v18 = vadd.f32 %v2281_v44, %v2280_v0 }
 0x1a0   : > { %v1931_v19 = vpop.f32.mrf.mxu2  ;;  %v2096_v20 = vpop.f32.mrf.mxu3 }
 0x1a1   : > { %v1932_v31 = vadd.f32 %v4256_v56, %v1931_v19  ;;  %v2097_v25 = vadd.f32 %v4256_v56, %v2096_v20  ;;  %v1624_v33 = vpop.f32.mrf.mxu0  ;;  %v1789_v35 = vpop.f32.mrf.mxu1 }
 0x1a2   : > { %v1790_v51 = vadd.f32 %v4256_v56, %v1789_v35  ;;  %v1625_v60 = vadd.f32 %v4256_v56, %v1624_v33 }
 0x1a3   : > { %v2339_v52 = vmax.f32 %v1932_v31, 0.0  ;;  %v2405_v26 = vmax.f32 %v2097_v25, 0.0 }
 0x1a4   : > { %v2282_v27 = vmax.f32 %v1790_v51, 0.0  ;;  %3434 = vmatmul.msk.bf16.gmra.mxu0 %vm1146_vm1, %v3566_v24  ;;  %3467 = vmatmul.msk.bf16.gmra.mxu1 %vm1146_vm1, %v3599_v29 }
 0x1a5   : > { %v2614_v32 = vadd.f32 %v2613_v7, %v2339_v52  ;;  %v2690_v53 = vadd.f32 %v2689_v12, %v2405_v26  ;;  %3496 = vmatmul.msk.bf16.gmra.mxu2 %vm1146_vm1, %v3628_v42  ;;  %3529 = vmatmul.msk.bf16.gmra.mxu3 %vm1146_vm1, %v3661_v48  ;;  %v3567_v52 = vld [vmem:[%s3879_s15 + $0xc8] sm:$0xff]  ;;  %v3600_v26 = vld [vmem:[%s3879_s15 + $0x1d0] sm:$0xff] }
 0x1a6   : > { %v2552_v0 = vadd.f32 %v2551_v18, %v2282_v27  ;;  %v2216_v18 = vmax.f32 %v1625_v60, 0.0 }
 0x1a8   : > { %v1934_v62 = vpop.f32.mrf.mxu2  ;;  %v2099_v2 = vpop.f32.mrf.mxu3 }
 0x1a9   : > { %v1935_v5 = vadd.f32 %v4256_v56, %v1934_v62  ;;  %v2100_v6 = vadd.f32 %v4256_v56, %v2099_v2  ;;  %v1626_v44 = vpop.f32.mrf.mxu0  ;;  %v1791_v19 = vpop.f32.mrf.mxu1 }
 0x1aa   : > { %v1627_v7 = vadd.f32 %v4256_v56, %v1626_v44  ;;  %v1792_v12 = vadd.f32 %v4256_v56, %v1791_v19  ;;  %v3662_v44 = vld [vmem:[%s3879_s15 + $0x3c0] sm:$0xff] }
 0x1ab   : > { %v2340_v20 = vmax.f32 %v1935_v5, 0.0  ;;  %v2406_v24 = vmax.f32 %v2100_v6, 0.0  ;;  %v3629_v6 = vld [vmem:[%s3879_s15 + $0x2b8] sm:$0xff] }
 0x1ac   : > { %v2217_v29 = vmax.f32 %v1627_v7, 0.0  ;;  %v2283_v31 = vmax.f32 %v1792_v12, 0.0 }
 0x1ad   : > { %v2615_v25 = vadd.f32 %v2614_v32, %v2340_v20  ;;  %v2691_v33 = vadd.f32 %v2690_v53, %v2406_v24 }
 0x1ae   : > { %v2477_v35 = vadd.f32 %v2217_v29, %v2216_v18  ;;  %v2553_v42 = vadd.f32 %v2552_v0, %v2283_v31  ;;  %v2754_v0 = vld [vmem:[%s4673_s3 + $0x50] sm:$0xff] }
 0x1af   : > { %2792 = vmatpush.msrb.mxu1 %v2754_v0 }
 0x1b0   : > { %v1936_v48 = vpop.f32.mrf.mxu2  ;;  %v2101_v51 = vpop.f32.mrf.mxu3 }
 0x1b1   : > { %v1937_v27 = vadd.f32 %v4256_v56, %v1936_v48  ;;  %v2102_v62 = vadd.f32 %v4256_v56, %v2101_v51  ;;  %v1629_v2 = vpop.f32.mrf.mxu0  ;;  %v1794_v5 = vpop.f32.mrf.mxu1 }
 0x1b2   : > { %v1630_v60 = vadd.f32 %v4256_v56, %v1629_v2  ;;  %v1795_v19 = vadd.f32 %v4256_v56, %v1794_v5 }
 0x1b3   : > { %v2341_v32 = vmax.f32 %v1937_v27, 0.0  ;;  %v2407_v53 = vmax.f32 %v2102_v62, 0.0 }
 0x1b4   : > { %v2218_v7 = vmax.f32 %v1630_v60, 0.0  ;;  %3435 = vmatmul.msk.bf16.gmra.mxu0 %vm1146_vm1, %v3567_v52  ;;  %3468 = vmatmul.msk.bf16.gmra.mxu1 %vm1146_vm1, %v3600_v26  ;;  %v2284_v18 = vmax.f32 %v1795_v19, 0.0  ;;  %v2753_v60 = vld [vmem:[%s4673_s3 + $0x48] sm:$0xff] }
 0x1b5   : > { %v2616_v12 = vadd.f32 %v2615_v25, %v2341_v32  ;;  %v4291_v20 = vadd.f32 %v2691_v33, %v2407_v53  ;;  %3497 = vmatmul.msk.bf16.gmra.mxu2 %vm1146_vm1, %v3629_v6  ;;  %3530 = vmatmul.msk.bf16.gmra.mxu3 %vm1146_vm1, %v3662_v44  ;;  %v3568_v32 = vld [vmem:[%s3879_s15 + $0xd0] sm:$0xff]  ;;  %v3601_v53 = vld [vmem:[%s3879_s15 + $0x1d8] sm:$0xff] }
 0x1b6   : > { %v2478_v24 = vadd.f32 %v2477_v35, %v2218_v7  ;;  %v2554_v52 = vadd.f32 %v2553_v42, %v2284_v18  ;;  %2793 = vmatpush.msrb.mxu1 %v2753_v60 }
 0x1b7   : > { %4685 = vst [vmem:[#allocation9_spill] sm:$0xff] %v4291_v20  ;;  %v3666_v20 = vld [vmem:[%s3879_s15 + $0x3e0] sm:$0xff] }
 0x1b8   : > { %v1939_v29 = vpop.f32.mrf.mxu2  ;;  %v2104_v31 = vpop.f32.mrf.mxu3 }
 0x1b9   : > { %v1940_v48 = vadd.f32 %v4256_v56, %v1939_v29  ;;  %v1631_v51 = vpop.f32.mrf.mxu0  ;;  %v1796_v27 = vpop.f32.mrf.mxu1  ;;  %v2105_v5 = vadd.f32 %v4256_v56, %v2104_v31  ;;  %v3663_v31 = vld [vmem:[%s3879_s15 + $0x3c8] sm:$0xff] }
 0x1ba   : > { %v1632_v25 = vadd.f32 %v4256_v56, %v1631_v51  ;;  %v1797_v33 = vadd.f32 %v4256_v56, %v1796_v27 }
 0x1bb   : > { %v2342_v26 = vmax.f32 %v1940_v48, 0.0  ;;  %v2408_v0 = vmax.f32 %v2105_v5, 0.0  ;;  %v3630_v48 = vld [vmem:[%s3879_s15 + $0x2c0] sm:$0xff] }
 0x1bc   : > { %v2219_v62 = vmax.f32 %v1632_v25, 0.0  ;;  %v2285_v2 = vmax.f32 %v1797_v33, 0.0 }
 0x1bd   : > { %v2617_v35 = vadd.f32 %v2616_v12, %v2342_v26 }
 0x1be   : > { %v2479_v6 = vadd.f32 %v2478_v24, %v2219_v62  ;;  %v2555_v44 = vadd.f32 %v2554_v52, %v2285_v2 }
 0x1c0   : > { %v1941_v42 = vpop.f32.mrf.mxu2  ;;  %v2106_v19 = vpop.f32.mrf.mxu3 }
 0x1c1   : > { %v1942_v7 = vadd.f32 %v4256_v56, %v1941_v42  ;;  %v2107_v18 = vadd.f32 %v4256_v56, %v2106_v19  ;;  %v1634_v12 = vpop.f32.mrf.mxu0  ;;  %v1799_v29 = vpop.f32.mrf.mxu1 }
 0x1c2   : > { %v1635_v24 = vadd.f32 %v4256_v56, %v1634_v12  ;;  %v1800_v51 = vadd.f32 %v4256_v56, %v1799_v29 }
 0x1c3   : > { %v2343_v27 = vmax.f32 %v1942_v7, 0.0  ;;  %v2409_v52 = vmax.f32 %v2107_v18, 0.0 }
 0x1c4   : > { %v2220_v25 = vmax.f32 %v1635_v24, 0.0  ;;  %v2286_v33 = vmax.f32 %v1800_v51, 0.0  ;;  %3436 = vmatmul.msk.bf16.gmra.mxu0 %vm1146_vm1, %v3568_v32  ;;  %3469 = vmatmul.msk.bf16.gmra.mxu1 %vm1146_vm1, %v3601_v53  ;;  %v3569_v51 = vld [vmem:[%s3879_s15 + $0xd8] sm:$0xff] }
 0x1c5   : > { %v4312_v26 = vadd.f32 %v2617_v35, %v2343_v27  ;;  %v2699_v62 = vadd.f32 %v2409_v52, %v2408_v0  ;;  %3498 = vmatmul.msk.bf16.gmra.mxu2 %vm1146_vm1, %v3630_v48  ;;  %3531 = vmatmul.msk.bf16.gmra.mxu3 %vm1146_vm1, %v3663_v31  ;;  %v3602_v27 = vld [vmem:[%s3879_s15 + $0x1e0] sm:$0xff] }
 0x1c6   : > { %v2480_v2 = vadd.f32 %v2479_v6, %v2220_v25  ;;  %v2556_v5 = vadd.f32 %v2555_v44, %v2286_v33 }
 0x1c7   : > { %4686 = vst [vmem:[#allocation10_spill] sm:$0xff] %v4312_v26 }
 0x1c8   : > { %v1944_v60 = vpop.f32.mrf.mxu2  ;;  %v2109_v42 = vpop.f32.mrf.mxu3 }
 0x1c9   : > { %v2110_v19 = vadd.f32 %v4256_v56, %v2109_v42  ;;  %v1636_v7 = vpop.f32.mrf.mxu0  ;;  %v1801_v18 = vpop.f32.mrf.mxu1  ;;  %v1945_v6 = vadd.f32 %v4256_v56, %v1944_v60 }
 0x1ca   : > { %v1637_v32 = vadd.f32 %v4256_v56, %v1636_v7  ;;  %v1802_v35 = vadd.f32 %v4256_v56, %v1801_v18  ;;  %v3631_v7 = vld [vmem:[%s3879_s15 + $0x2c8] sm:$0xff]  ;;  %v3664_v18 = vld [vmem:[%s3879_s15 + $0x3d0] sm:$0xff] }
 0x1cb   : > { %v2410_v53 = vmax.f32 %v2110_v19, 0.0  ;;  %v2344_v52 = vmax.f32 %v1945_v6, 0.0 }
 0x1cc   : > { %v2221_v0 = vmax.f32 %v1637_v32, 0.0  ;;  %v2287_v12 = vmax.f32 %v1802_v35, 0.0 }
 0x1cd   : > { %v2700_v44 = vadd.f32 %v2699_v62, %v2410_v53 }
 0x1ce   : > { %v2481_v29 = vadd.f32 %v2480_v2, %v2221_v0  ;;  %v2557_v48 = vadd.f32 %v2556_v5, %v2287_v12 }
 0x1d0   : > { %v1946_v31 = vpop.f32.mrf.mxu2  ;;  %v2111_v24 = vpop.f32.mrf.mxu3 }
 0x1d1   : > { %v1947_v25 = vadd.f32 %v4256_v56, %v1946_v31  ;;  %v2112_v33 = vadd.f32 %v4256_v56, %v2111_v24  ;;  %v1639_v42 = vpop.f32.mrf.mxu0  ;;  %v1804_v19 = vpop.f32.mrf.mxu1 }
 0x1d2   : > { %v1640_v32 = vadd.f32 %v4256_v56, %v1639_v42  ;;  %v1805_v60 = vadd.f32 %v4256_v56, %v1804_v19 }
 0x1d3   : > { %v2345_v62 = vmax.f32 %v1947_v25, 0.0  ;;  %v2411_v2 = vmax.f32 %v2112_v33, 0.0 }
 0x1d4   : > { %v2222_v5 = vmax.f32 %v1640_v32, 0.0  ;;  %v2288_v35 = vmax.f32 %v1805_v60, 0.0  ;;  %3437 = vmatmul.msk.bf16.gmra.mxu0 %vm1146_vm1, %v3569_v51  ;;  %3470 = vmatmul.msk.bf16.gmra.mxu1 %vm1146_vm1, %v3602_v27 }
 0x1d5   : > { %v2625_v53 = vadd.f32 %v2345_v62, %v2344_v52  ;;  %v2701_v0 = vadd.f32 %v2700_v44, %v2411_v2  ;;  %3499 = vmatmul.msk.bf16.gmra.mxu2 %vm1146_vm1, %v3631_v7  ;;  %3532 = vmatmul.msk.bf16.gmra.mxu3 %vm1146_vm1, %v3664_v18  ;;  %v2752_v62 = vld [vmem:[%s4673_s3 + $0x40] sm:$0xff] }
 0x1d6   : > { %v2482_v12 = vadd.f32 %v2481_v29, %v2222_v5  ;;  %v2558_v6 = vadd.f32 %v2557_v48, %v2288_v35  ;;  %2794 = vmatpush.msrb.mxu1 %v2752_v62  ;;  %v3570_v35 = vld [vmem:[%s3879_s15 + $0xe0] sm:$0xff] }
 0x1d8   : > { %v1949_v31 = vpop.f32.mrf.mxu2  ;;  %v2114_v24 = vpop.f32.mrf.mxu3 }
 0x1d9   : > { %v1950_v42 = vadd.f32 %v4256_v56, %v1949_v31  ;;  %v2115_v25 = vadd.f32 %v4256_v56, %v2114_v24  ;;  %v1641_v33 = vpop.f32.mrf.mxu0  ;;  %v1806_v19 = vpop.f32.mrf.mxu1  ;;  %v3603_v31 = vld [vmem:[%s3879_s15 + $0x1e8] sm:$0xff] }
 0x1da   : > { %v1642_v51 = vadd.f32 %v4256_v56, %v1641_v33  ;;  %v1807_v44 = vadd.f32 %v4256_v56, %v1806_v19  ;;  %v3632_v19 = vld [vmem:[%s3879_s15 + $0x2d0] sm:$0xff] }
 0x1db   : > { %v2346_v27 = vmax.f32 %v1950_v42, 0.0  ;;  %v2412_v52 = vmax.f32 %v2115_v25, 0.0 }
 0x1dc   : > { %v2223_v7 = vmax.f32 %v1642_v51, 0.0  ;;  %v2289_v29 = vmax.f32 %v1807_v44, 0.0 }
 0x1dd   : > { %v2626_v48 = vadd.f32 %v2625_v53, %v2346_v27  ;;  %v2702_v18 = vadd.f32 %v2701_v0, %v2412_v52  ;;  %v3665_v53 = vld [vmem:[%s3879_s15 + $0x3d8] sm:$0xff] }
 0x1de   : > { %v2483_v32 = vadd.f32 %v2482_v12, %v2223_v7  ;;  %v2559_v60 = vadd.f32 %v2558_v6, %v2289_v29 }
 0x1e0   : > { %v1951_v2 = vpop.f32.mrf.mxu2  ;;  %v2116_v5 = vpop.f32.mrf.mxu3 }
 0x1e1   : > { %v1952_v24 = vadd.f32 %v4256_v56, %v1951_v2  ;;  %v2117_v42 = vadd.f32 %v4256_v56, %v2116_v5  ;;  %v1644_v25 = vpop.f32.mrf.mxu0  ;;  %v1809_v33 = vpop.f32.mrf.mxu1 }
 0x1e2   : > { %v1645_v0 = vadd.f32 %v4256_v56, %v1644_v25  ;;  %v1810_v12 = vadd.f32 %v4256_v56, %v1809_v33 }
 0x1e3   : > { %v2347_v6 = vmax.f32 %v1952_v24, 0.0  ;;  %v2413_v51 = vmax.f32 %v2117_v42, 0.0 }
 0x1e4   : > { %v2224_v44 = vmax.f32 %v1645_v0, 0.0  ;;  %v2290_v27 = vmax.f32 %v1810_v12, 0.0  ;;  %3438 = vmatmul.msk.bf16.gmra.mxu0 %vm1146_vm1, %v3570_v35  ;;  %3471 = vmatmul.msk.bf16.gmra.mxu1 %vm1146_vm1, %v3603_v31 }
 0x1e5   : > { %v2627_v52 = vadd.f32 %v2626_v48, %v2347_v6  ;;  %v2703_v7 = vadd.f32 %v2702_v18, %v2413_v51  ;;  %3500 = vmatmul.msk.bf16.gmra.mxu2 %vm1146_vm1, %v3632_v19  ;;  %3533 = vmatmul.msk.bf16.gmra.mxu3 %vm1146_vm1, %v3665_v53 }
 0x1e6   : > { %v2484_v29 = vadd.f32 %v2483_v32, %v2224_v44  ;;  %v2560_v62 = vadd.f32 %v2559_v60, %v2290_v27  ;;  %v3571_v44 = vld [vmem:[%s3879_s15 + $0xe8] sm:$0xff] }
 0x1e8   : > { %v1954_v2 = vpop.f32.mrf.mxu2  ;;  %v2119_v5 = vpop.f32.mrf.mxu3 }
 0x1e9   : > { %v1955_v25 = vadd.f32 %v4256_v56, %v1954_v2  ;;  %v2120_v24 = vadd.f32 %v4256_v56, %v2119_v5  ;;  %v1646_v42 = vpop.f32.mrf.mxu0  ;;  %v1811_v33 = vpop.f32.mrf.mxu1 }
 0x1ea   : > { %v1647_v35 = vadd.f32 %v4256_v56, %v1646_v42  ;;  %v1812_v48 = vadd.f32 %v4256_v56, %v1811_v33  ;;  %v3633_v33 = vld [vmem:[%s3879_s15 + $0x2d8] sm:$0xff] }
 0x1eb   : > { %v2348_v18 = vmax.f32 %v1955_v25, 0.0  ;;  %v2414_v31 = vmax.f32 %v2120_v24, 0.0 }
 0x1ec   : > { %v2225_v19 = vmax.f32 %v1647_v35, 0.0  ;;  %v2291_v32 = vmax.f32 %v1812_v48, 0.0 }
 0x1ed   : > { %v2628_v60 = vadd.f32 %v2627_v52, %v2348_v18  ;;  %v2704_v53 = vadd.f32 %v2703_v7, %v2414_v31 }
 0x1ee   : > { %v2485_v0 = vadd.f32 %v2484_v29, %v2225_v19  ;;  %v2561_v12 = vadd.f32 %v2560_v62, %v2291_v32 }
 0x1f0   : > { %v1956_v6 = vpop.f32.mrf.mxu2  ;;  %v2121_v51 = vpop.f32.mrf.mxu3 }
 0x1f1   : > { %v1957_v27 = vadd.f32 %v4256_v56, %v1956_v6  ;;  %v2122_v2 = vadd.f32 %v4256_v56, %v2121_v51  ;;  %v1649_v5 = vpop.f32.mrf.mxu0  ;;  %v1814_v42 = vpop.f32.mrf.mxu1 }
 0x1f2   : > { %v1650_v25 = vadd.f32 %v4256_v56, %v1649_v5  ;;  %v1815_v24 = vadd.f32 %v4256_v56, %v1814_v42 }
 0x1f3   : > { %v2349_v35 = vmax.f32 %v1957_v27, 0.0  ;;  %v2415_v52 = vmax.f32 %v2122_v2, 0.0 }
 0x1f4   : > { %v2226_v7 = vmax.f32 %v1650_v25, 0.0  ;;  %v2292_v29 = vmax.f32 %v1815_v24, 0.0  ;;  %3439 = vmatmul.msk.bf16.gmra.mxu0 %vm1146_vm1, %v3571_v44 }
 0x1f5   : > { %v2629_v62 = vadd.f32 %v2628_v60, %v2349_v35  ;;  %v2705_v48 = vadd.f32 %v2704_v53, %v2415_v52  ;;  %3501 = vmatmul.msk.bf16.gmra.mxu2 %vm1146_vm1, %v3633_v33  ;;  %3534 = vmatmul.msk.bf16.gmra.mxu3 %vm1146_vm1, %v3666_v20  ;;  %v2751_v33 = vld [vmem:[%s4673_s3 + $0x38] sm:$0xff] }
 0x1f6   : > { %v2486_v18 = vadd.f32 %v2485_v0, %v2226_v7  ;;  %v2562_v31 = vadd.f32 %v2561_v12, %v2292_v29  ;;  %2795 = vmatpush.msrb.mxu1 %v2751_v33  ;;  %v3572_v7 = vld [vmem:[%s3879_s15 + $0xf0] sm:$0xff] }
 0x1f8   : > { %v1959_v19 = vpop.f32.mrf.mxu2  ;;  %v2124_v32 = vpop.f32.mrf.mxu3 }
 0x1f9   : > { %v1960_v6 = vadd.f32 %v4256_v56, %v1959_v19  ;;  %v2125_v51 = vadd.f32 %v4256_v56, %v2124_v32  ;;  %v1651_v27 = vpop.f32.mrf.mxu0  ;;  %v1816_v2 = vpop.f32.mrf.mxu1 }
 0x1fa   : > { %v1652_v5 = vadd.f32 %v4256_v56, %v1651_v27  ;;  %v1817_v60 = vadd.f32 %v4256_v56, %v1816_v2  ;;  %v3667_v27 = vld [vmem:[%s3879_s15 + $0x3e8] sm:$0xff] }
 0x1fb   : > { %v2350_v53 = vmax.f32 %v1960_v6, 0.0  ;;  %v2416_v44 = vmax.f32 %v2125_v51, 0.0  ;;  %v3634_v51 = vld [vmem:[%s3879_s15 + $0x2e0] sm:$0xff] }
 0x1fc   : > { %v2227_v42 = vmax.f32 %v1652_v5, 0.0  ;;  %v2293_v20 = vmax.f32 %v1817_v60, 0.0 }
 0x1fd   : > { %v2630_v0 = vadd.f32 %v2629_v62, %v2350_v53  ;;  %v2706_v12 = vadd.f32 %v2705_v48, %v2416_v44 }
 0x1fe   : > { %v2487_v25 = vadd.f32 %v2486_v18, %v2227_v42  ;;  %v2563_v24 = vadd.f32 %v2562_v31, %v2293_v20 }
 0x200   : > { %v1961_v35 = vpop.f32.mrf.mxu2  ;;  %v2126_v52 = vpop.f32.mrf.mxu3 }
 0x201   : > { %v1962_v29 = vadd.f32 %v4256_v56, %v1961_v35  ;;  %v2127_v19 = vadd.f32 %v4256_v56, %v2126_v52  ;;  %v1654_v32 = vpop.f32.mrf.mxu0  ;;  %v1819_v6 = vpop.f32.mrf.mxu1 }
 0x202   : > { %v1655_v62 = vadd.f32 %v4256_v56, %v1654_v32  ;;  %v1820_v48 = vadd.f32 %v4256_v56, %v1819_v6 }
 0x203   : > { %v2351_v2 = vmax.f32 %v1962_v29, 0.0  ;;  %v2417_v5 = vmax.f32 %v2127_v19, 0.0 }
 0x204   : > { %v2228_v18 = vmax.f32 %v1655_v62, 0.0  ;;  %v2294_v31 = vmax.f32 %v1820_v48, 0.0  ;;  %3440 = vmatmul.msk.bf16.gmra.mxu0 %vm1146_vm1, %v3572_v7 }
 0x205   : > { %v2631_v60 = vadd.f32 %v2630_v0, %v2351_v2  ;;  %v2707_v53 = vadd.f32 %v2706_v12, %v2417_v5  ;;  %3502 = vmatmul.msk.bf16.gmra.mxu2 %vm1146_vm1, %v3634_v51  ;;  %3535 = vmatmul.msk.bf16.gmra.mxu3 %vm1146_vm1, %v3667_v27  ;;  %v3573_v5 = vld [vmem:[%s3879_s15 + $0xf8] sm:$0xff] }
 0x206   : > { %v2488_v44 = vadd.f32 %v2487_v25, %v2228_v18  ;;  %v2564_v42 = vadd.f32 %v2563_v24, %v2294_v31 }
 0x208   : > { %v1964_v20 = vpop.f32.mrf.mxu2  ;;  %v2129_v33 = vpop.f32.mrf.mxu3 }
 0x209   : > { %v1965_v35 = vadd.f32 %v4256_v56, %v1964_v20  ;;  %v2130_v52 = vadd.f32 %v4256_v56, %v2129_v33  ;;  %v1656_v29 = vpop.f32.mrf.mxu0  ;;  %v1821_v19 = vpop.f32.mrf.mxu1 }
 0x20a   : > { %v1657_v32 = vadd.f32 %v4256_v56, %v1656_v29  ;;  %v1822_v0 = vadd.f32 %v4256_v56, %v1821_v19  ;;  %v3635_v29 = vld [vmem:[%s3879_s15 + $0x2e8] sm:$0xff]  ;;  %v3668_v19 = vld [vmem:[%s3879_s15 + $0x3f0] sm:$0xff] }
 0x20b   : > { %v2352_v12 = vmax.f32 %v1965_v35, 0.0  ;;  %v2418_v7 = vmax.f32 %v2130_v52, 0.0 }
 0x20c   : > { %v2229_v6 = vmax.f32 %v1657_v32, 0.0  ;;  %v2295_v25 = vmax.f32 %v1822_v0, 0.0 }
 0x20d   : > { %v2632_v24 = vadd.f32 %v2631_v60, %v2352_v12  ;;  %v2708_v51 = vadd.f32 %v2707_v53, %v2418_v7 }
 0x20e   : > { %v2489_v27 = vadd.f32 %v2488_v44, %v2229_v6  ;;  %v2565_v62 = vadd.f32 %v2564_v42, %v2295_v25  ;;  %v2750_v6 = vld [vmem:[%s4673_s3 + $0x30] sm:$0xff] }
 0x20f   : > { %2796 = vmatpush.msrb.mxu1 %v2750_v6  ;;  %v3636_v6 = vld [vmem:[%s3879_s15 + $0x2f0] sm:$0xff] }
 0x210   : > { %v1966_v48 = vpop.f32.mrf.mxu2  ;;  %v2131_v2 = vpop.f32.mrf.mxu3 }
 0x211   : > { %v1967_v18 = vadd.f32 %v4256_v56, %v1966_v48  ;;  %v2132_v31 = vadd.f32 %v4256_v56, %v2131_v2  ;;  %v1659_v20 = vpop.f32.mrf.mxu0  ;;  %v1824_v33 = vpop.f32.mrf.mxu1 }
 0x212   : > { %v1660_v35 = vadd.f32 %v4256_v56, %v1659_v20  ;;  %v1825_v52 = vadd.f32 %v4256_v56, %v1824_v33 }
 0x213   : > { %v2353_v32 = vmax.f32 %v1967_v18, 0.0  ;;  %v2419_v60 = vmax.f32 %v2132_v31, 0.0 }
 0x214   : > { %v2230_v53 = vmax.f32 %v1660_v35, 0.0  ;;  %v2296_v44 = vmax.f32 %v1825_v52, 0.0  ;;  %3441 = vmatmul.msk.bf16.gmra.mxu0 %vm1146_vm1, %v3573_v5  ;;  %v3574_v52 = vld [vmem:[%s3879_s15 + $0x100] sm:$0xff] }
 0x215   : > { %v2633_v42 = vadd.f32 %v2632_v24, %v2353_v32  ;;  %v2709_v0 = vadd.f32 %v2708_v51, %v2419_v60  ;;  %3503 = vmatmul.msk.bf16.gmra.mxu2 %vm1146_vm1, %v3635_v29  ;;  %3536 = vmatmul.msk.bf16.gmra.mxu3 %vm1146_vm1, %v3668_v19 }
 0x216   : > { %v2490_v12 = vadd.f32 %v2489_v27, %v2230_v53  ;;  %v4396_v7 = vadd.f32 %v2565_v62, %v2296_v44 }
 0x218   : > { %v1969_v25 = vpop.f32.mrf.mxu2  ;;  %v2134_v48 = vpop.f32.mrf.mxu3 }
 0x219   : > { %v1970_v2 = vadd.f32 %v4256_v56, %v1969_v25  ;;  %v2135_v24 = vadd.f32 %v4256_v56, %v2134_v48  ;;  %v1661_v51 = vpop.f32.mrf.mxu0  ;;  %v4403_v5 = vpop.f32.mrf.mxu1  ;;  %v3669_v25 = vld [vmem:[%s3879_s15 + $0x3f8] sm:$0xff]  ;;  %s3539_s15 = sshll.u32 %s3839_s22, 3 }
 0x21a   : > { %v1662_v27 = vadd.f32 %v4256_v56, %v1661_v51  ;;  %s2819_s11 = scalar_lea.hbm %s4675_s5, %s3539_s15 }
 0x21b   : > { %v2354_v62 = vmax.f32 %v1970_v2, 0.0  ;;  %v2420_v18 = vmax.f32 %v2135_v24, 0.0  ;;  %s2823_s17 = sshll.u32 %s2819_s11, 4  ;;  %s2824_s17 = int_to_ptr.hbm [resolvable:$true] %s2823_s17 }
 0x21c   : > { %v2231_v31 = vmax.f32 %v1662_v27, 0.0  ;;  %s3738_s25 = sshra.s32 %s2824_s17, 4  ;;  %s3739_s25 = int_to_ptr.hbm [resolvable:$true] %s3738_s25 }
 0x21d   : > { %v2634_v20 = vadd.f32 %v2633_v42, %v2354_v62  ;;  %v2710_v33 = vadd.f32 %v2709_v0, %v2420_v18  ;;  %s3740_s22 = scalar_lea.hbm %s3739_s25, 8  ;;  %p3745_p0 = scmp.lt.s32.totalorder %s3739_s25, %s4675_s5 }
 0x21e   : > { %v2491_v29 = vadd.f32 %v2490_v12, %v2231_v31  ;;  %p3741_p11 = scmp.ne.s32.totalorder %s3739_s25, %s3740_s22  ;;  %p3746_p1 = scmp.lt.s32.totalorder %s3744_s6, %s3740_s22 }
 0x220   : > { %v1971_v19 = vpop.f32.mrf.mxu2  ;;  %v2136_v35 = vpop.f32.mrf.mxu3  ;;  %p3742_p12 = pnand %p3741_p11, %p3856_p5  ;;  %p3747_p2 = por %p3746_p1, %p3745_p0 }
 0x221   : > { %v1972_v32 = vadd.f32 %v4256_v56, %v1971_v19  ;;  %v2137_v60 = vadd.f32 %v4256_v56, %v2136_v35  ;;  %v1664_v53 = vpop.f32.mrf.mxu0  ;;  %v4409_v44 = vpop.f32.mrf.mxu1 }
 0x222   : > { %v1665_v48 = vadd.f32 %v4256_v56, %v1664_v53  ;;  %p3743_p13 = pneg %p3742_p12 }
 0x223   : > { %v2355_v2 = vmax.f32 %v1972_v32, 0.0  ;;  %v2421_v24 = vmax.f32 %v2137_v60, 0.0 }
 0x224   : > { %v2232_v51 = vmax.f32 %v1665_v48, 0.0  ;;  %3442 = vmatmul.msk.bf16.gmra.mxu0 %vm1146_vm1, %v3574_v52  ;;  %p3748_p3 = pnand %p3747_p2, %p3743_p13 }
 0x225   : > { %v2635_v42 = vadd.f32 %v2634_v20, %v2355_v2  ;;  %v2711_v0 = vadd.f32 %v2710_v33, %v2421_v24  ;;  %3504 = vmatmul.msk.bf16.gmra.mxu2 %vm1146_vm1, %v3636_v6  ;;  %3537 = vmatmul.msk.bf16.gmra.mxu3 %vm1146_vm1, %v3669_v25 }
 0x226   : > { %v2492_v12 = vadd.f32 %v2491_v29, %v2232_v51 }
 0x228   : > { %v1974_v27 = vpop.f32.mrf.mxu2  ;;  %v2139_v62 = vpop.f32.mrf.mxu3 }
 0x229   : > { %v1975_v18 = vadd.f32 %v4256_v56, %v1974_v27  ;;  %v2140_v31 = vadd.f32 %v4256_v56, %v2139_v62  ;;  %v1666_v19 = vpop.f32.mrf.mxu0  ;;  %v4419_v35 = vpop.f32.mrf.mxu1 }
 0x22a   : > { %v1667_v32 = vadd.f32 %v4256_v56, %v1666_v19 }
 0x22b   : > { %v2356_v60 = vmax.f32 %v1975_v18, 0.0  ;;  %v2422_v52 = vmax.f32 %v2140_v31, 0.0 }
 0x22c   : > { %v2233_v20 = vmax.f32 %v1667_v32, 0.0 }
 0x22d   : > { %v2636_v33 = vadd.f32 %v2635_v42, %v2356_v60  ;;  %v2712_v53 = vadd.f32 %v2711_v0, %v2422_v52  ;;  %v2749_v42 = vld [vmem:[%s4673_s3 + $0x28] sm:$0xff] }
 0x22e   : > { %v2493_v6 = vadd.f32 %v2492_v12, %v2233_v20  ;;  %2797 = vmatpush.msrb.mxu1 %v2749_v42 }
 0x230   : > { %v1976_v48 = vpop.f32.mrf.mxu2  ;;  %v2141_v25 = vpop.f32.mrf.mxu3 }
 0x231   : > { %v1977_v29 = vadd.f32 %v4256_v56, %v1976_v48  ;;  %v2142_v2 = vadd.f32 %v4256_v56, %v2141_v25  ;;  %v1669_v24 = vpop.f32.mrf.mxu0  ;;  %v4424_v51 = vpop.f32.mrf.mxu1 }
 0x232   : > { %v1670_v27 = vadd.f32 %v4256_v56, %v1669_v24 }
 0x233   : > { %v2357_v62 = vmax.f32 %v1977_v29, 0.0  ;;  %v2423_v40 = vmax.f32 %v2142_v2, 0.0 }
 0x234   : > { %v2234_v19 = vmax.f32 %v1670_v27, 0.0 }
 0x235   : > { %v2637_v18 = vadd.f32 %v2636_v33, %v2357_v62  ;;  %v2713_v31 = vadd.f32 %v2712_v53, %v2423_v40 }
 0x236   : > { %v2494_v32 = vadd.f32 %v2493_v6, %v2234_v19 }
 0x238   : > { %v1979_v0 = vpop.f32.mrf.mxu2  ;;  %v2144_v12 = vpop.f32.mrf.mxu3 }
 0x239   : > { %v1980_v60 = vadd.f32 %v4256_v56, %v1979_v0  ;;  %v2145_v52 = vadd.f32 %v4256_v56, %v2144_v12  ;;  %v1671_v20 = vpop.f32.mrf.mxu0  ;;  %v1836_v48 = vpop.f32.mrf.mxu1 }
 0x23a   : > { %v1672_v25 = vadd.f32 %v4256_v56, %v1671_v20 }
 0x23b   : > { %v2358_v29 = vmax.f32 %v1980_v60, 0.0  ;;  %v2424_v2 = vmax.f32 %v2145_v52, 0.0 }
 0x23c   : > { %v2235_v33 = vmax.f32 %v1672_v25, 0.0 }
 0x23d   : > { %v2638_v40 = vadd.f32 %v2637_v18, %v2358_v29  ;;  %v2714_v53 = vadd.f32 %v2713_v31, %v2424_v2 }
 0x23e   : > { %v2495_v6 = vadd.f32 %v2494_v32, %v2235_v33 }
 0x240   : > { %v1981_v24 = vpop.f32.mrf.mxu2  ;;  %v2146_v27 = vpop.f32.mrf.mxu3 }
 0x241   : > { %v1982_v62 = vadd.f32 %v4256_v56, %v1981_v24  ;;  %v2147_v19 = vadd.f32 %v4256_v56, %v2146_v27  ;;  %v1674_v42 = vpop.f32.mrf.mxu0  ;;  %v1839_v0 = vpop.f32.mrf.mxu1 }
 0x242   : > { %v1675_v12 = vadd.f32 %v4256_v56, %v1674_v42 }
 0x243   : > { %v2359_v26 = vmax.f32 %v1982_v62, 0.0  ;;  %v2425_v10 = vmax.f32 %v2147_v19, 0.0 }
 0x244   : > { %v2236_v38 = vmax.f32 %v1675_v12, 0.0 }
 0x245   : > { %v2639_v20 = vadd.f32 %v2638_v40, %v2359_v26  ;;  %v2715_v60 = vadd.f32 %v2714_v53, %v2425_v10  ;;  %v1827_v26 = vadd.f32 %v4256_v56, %v4403_v5 }
 0x246   : > { %v2496_v52 = vadd.f32 %v2495_v6, %v2236_v38 }
 0x248   : > { %v1984_v25 = vpop.f32.mrf.mxu2  ;;  %v2149_v18 = vpop.f32.mrf.mxu3 }
 0x249   : > { %v1985_v31 = vadd.f32 %v4256_v56, %v1984_v25  ;;  %v2150_v32 = vadd.f32 %v4256_v56, %v2149_v18  ;;  %v1676_v29 = vpop.f32.mrf.mxu0  ;;  %v1841_v2 = vpop.f32.mrf.mxu1  ;;  %v2297_v25 = vmax.f32 %v1827_v26, 0.0  ;;  %v1830_v18 = vadd.f32 %v4256_v56, %v4409_v44 }
 0x24a   : > { %v1677_v33 = vadd.f32 %v4256_v56, %v1676_v29 }
 0x24b   : > { %v2360_v24 = vmax.f32 %v1985_v31, 0.0  ;;  %v2426_v27 = vmax.f32 %v2150_v32, 0.0 }
 0x24c   : > { %v2237_v11 = vmax.f32 %v1677_v33, 0.0  ;;  %v1832_v33 = vadd.f32 %v4256_v56, %v4419_v35 }
 0x24d   : > { %v2640_v42 = vadd.f32 %v2639_v20, %v2360_v24  ;;  %v2716_v62 = vadd.f32 %v2715_v60, %v2426_v27  ;;  %v1835_v27 = vadd.f32 %v4256_v56, %v4424_v51 }
 0x24e   : > { %v2497_v10 = vadd.f32 %v2496_v52, %v2237_v11  ;;  %v2567_v11 = vadd.f32 %v4396_v7, %v2297_v25  ;;  %v2298_v52 = vmax.f32 %v1830_v18, 0.0  ;;  %v1837_v7 = vadd.f32 %v4256_v56, %v1836_v48 }
 0x24f   : > { %v1840_v18 = vadd.f32 %v4256_v56, %v1839_v0 }
 0x250   : > { %v1986_v38 = vpop.f32.mrf.mxu2  ;;  %v2151_v40 = vpop.f32.mrf.mxu3 }
 0x251   : > { %v1987_v53 = vadd.f32 %v4256_v56, %v1986_v38  ;;  %v2152_v6 = vadd.f32 %v4256_v56, %v2151_v40  ;;  %v1679_v19 = vpop.f32.mrf.mxu0  ;;  %v1844_v12 = vpop.f32.mrf.mxu1 }
 0x252   : > { %v1680_v31 = vadd.f32 %v4256_v56, %v1679_v19  ;;  %v1845_v48 = vadd.f32 %v4256_v56, %v1844_v12 }
 0x253   : > { %v2361_v20 = vmax.f32 %v1987_v53, 0.0  ;;  %v2427_v60 = vmax.f32 %v2152_v6, 0.0 }
 0x254   : > { %v2238_v32 = vmax.f32 %v1680_v31, 0.0 }
 0x255   : > { %v2641_v29 = vadd.f32 %v2640_v42, %v2361_v20  ;;  %v2717_v5 = vadd.f32 %v2716_v62, %v2427_v60  ;;  %v2568_v42 = vadd.f32 %v2567_v11, %v2298_v52  ;;  %v2299_v62 = vmax.f32 %v1832_v33, 0.0 }
 0x256   : > { %v2498_v24 = vadd.f32 %v2497_v10, %v2238_v32  ;;  %v2300_v10 = vmax.f32 %v1835_v27, 0.0  ;;  %v2301_v32 = vmax.f32 %v1837_v7, 0.0  ;;  %v2302_v33 = vmax.f32 %v1840_v18, 0.0 }
 0x257   : > { %v2569_v60 = vadd.f32 %v2568_v42, %v2299_v62 }
 0x258   : > { %v1989_v26 = vpop.f32.mrf.mxu2  ;;  %v2154_v38 = vpop.f32.mrf.mxu3 }
 0x259   : > { %v1990_v44 = vadd.f32 %v4256_v56, %v1989_v26  ;;  %v2155_v40 = vadd.f32 %v4256_v56, %v2154_v38  ;;  %v1681_v53 = vpop.f32.mrf.mxu0  ;;  %v1846_v6 = vpop.f32.mrf.mxu1  ;;  %v1842_v26 = vadd.f32 %v4256_v56, %v1841_v2  ;;  %v2570_v52 = vadd.f32 %v2569_v60, %v2300_v10 }
 0x25a   : > { %v1682_v19 = vadd.f32 %v4256_v56, %v1681_v53  ;;  %v2748_v53 = vld [vmem:[%s4673_s3 + $0x20] sm:$0xff] }
 0x25b   : > { %v2362_v25 = vmax.f32 %v1990_v44, 0.0  ;;  %v2428_v35 = vmax.f32 %v2155_v40, 0.0  ;;  %v2571_v40 = vadd.f32 %v2570_v52, %v2301_v32  ;;  %v2303_v0 = vmax.f32 %v1842_v26, 0.0  ;;  %2798 = vmatpush.msrb.mxu1 %v2748_v53 }
 0x25c   : > { %v2239_v51 = vmax.f32 %v1682_v19, 0.0  ;;  %v1857_v52 = vadd.f32 %v4256_v56, %v3968_v54 }
 0x25d   : > { %v4456_v31 = vadd.f32 %v2641_v29, %v2362_v25  ;;  %v4458_v20 = vadd.f32 %v2717_v5, %v2428_v35  ;;  %v1847_v29 = vadd.f32 %v4256_v56, %v1846_v6  ;;  %v2572_v2 = vadd.f32 %v2571_v40, %v2302_v33 }
 0x25e   : > { %v2499_v11 = vadd.f32 %v2498_v24, %v2239_v51  ;;  %v2304_v24 = vmax.f32 %v1845_v48, 0.0  ;;  %v1855_v51 = vadd.f32 %v4256_v56, %v3961_v46  ;;  %v2747_v46 = vld [vmem:[%s4673_s3 + $0x18] sm:$0xff] }
 0x25f   : > { %v2573_v62 = vadd.f32 %v2572_v2, %v2303_v0  ;;  %v2305_v7 = vmax.f32 %v1847_v29, 0.0  ;;  %2799 = vmatpush.msrb.mxu1 %v2747_v46  ;;  %v2309_v29 = vmax.f32 %v1857_v52, 0.0 }
 0x260   : > { %v4462_v38 = vpop.f32.mrf.mxu2 }
 0x261   : > { %v1684_v44 = vpop.f32.mrf.mxu0  ;;  %v1849_v27 = vpop.f32.mrf.mxu1  ;;  %v2574_v25 = vadd.f32 %v2573_v62, %v2304_v24 }
 0x262   : > { %v1685_v5 = vadd.f32 %v4256_v56, %v1684_v44  ;;  %v1850_v12 = vadd.f32 %v4256_v56, %v1849_v27  ;;  %v1860_v27 = vadd.f32 %v4256_v56, %v3983_v1 }
 0x263   : > { %v2575_v60 = vadd.f32 %v2574_v25, %v2305_v7 }
 0x264   : > { %v2240_v42 = vmax.f32 %v1685_v5, 0.0  ;;  %v2306_v35 = vmax.f32 %v1850_v12, 0.0  ;;  %v1862_v5 = vadd.f32 %v4256_v56, %v3989_v9  ;;  %v2310_v24 = vmax.f32 %v1860_v27, 0.0 }
 0x266   : > { %v2500_v19 = vadd.f32 %v2499_v11, %v2240_v42  ;;  %v2576_v33 = vadd.f32 %v2575_v60, %v2306_v35  ;;  %v2308_v11 = vmax.f32 %v1855_v51, 0.0  ;;  %v4483_v42 = vpop.f32.mrf.mxu3  ;;  %v2311_v62 = vmax.f32 %v1862_v5, 0.0 }
 0x268   : > { %v1994_v10 = vpop.f32.mrf.mxu2 }
 0x269   : > { %v1686_v18 = vpop.f32.mrf.mxu0  ;;  %v1851_v6 = vpop.f32.mrf.mxu1 }
 0x26a   : > { %v1687_v32 = vadd.f32 %v4256_v56, %v1686_v18  ;;  %v1852_v26 = vadd.f32 %v4256_v56, %v1851_v6 }
 0x26c   : > { %v2241_v48 = vmax.f32 %v1687_v32, 0.0  ;;  %v2307_v44 = vmax.f32 %v1852_v26, 0.0 }
 0x26e   : > { %v2501_v40 = vadd.f32 %v2500_v19, %v2241_v48  ;;  %v2577_v0 = vadd.f32 %v2576_v33, %v2307_v44  ;;  %v4489_v9 = vpop.f32.mrf.mxu3  ;;  %v4494_v33 = vld [vmem:[%s4672_s2] ss:$0 sm:$0xff] }
 0x270   : > { %v2578_v53 = vadd.f32 %v2577_v0, %v2308_v11  ;;  %v1996_v54 = vpop.f32.mrf.mxu2 }
 0x271   : > { %v1689_v2 = vpop.f32.mrf.mxu0 }
 0x272   : > { %v2579_v12 = vadd.f32 %v2578_v53, %v2309_v29  ;;  %v1690_v1 = vadd.f32 %v4256_v56, %v1689_v2 }
 0x274   : > { %v2580_v7 = vadd.f32 %v2579_v12, %v2310_v24  ;;  %v2242_v19 = vmax.f32 %v1690_v1, 0.0  ;;  %v2471_v12 = vrot.slane %v4260_v14, 4 }
 0x276   : > { %v4486_v25 = vadd.f32 %v2580_v7, %v2311_v62  ;;  %v2502_v35 = vadd.f32 %v2501_v40, %v2242_v19  ;;  %v4497_v11 = vpop.f32.mrf.mxu3  ;;  %v2472_v7 = vadd.f32 %v2471_v12, %v4260_v14 }
 0x278   : > { %4687 = vst [vmem:[#allocation11_spill] sm:$0xff] %v4486_v25  ;;  %v1999_v18 = vpop.f32.mrf.mxu2 }
 0x279   : > { %v1691_v6 = vpop.f32.mrf.mxu0  ;;  %v2000_v14 = vadd.f32 %v4494_v33, %v1999_v18 }
 0x27a   : > { %v1692_v51 = vadd.f32 %v4256_v56, %v1691_v6 }
 0x27b   : > { %v2366_v25 = vmax.f32 %v2000_v14, 0.0 }
 0x27c   : > { %v2243_v60 = vmax.f32 %v1692_v51, 0.0 }
 0x27e   : > { %v2503_v32 = vadd.f32 %v2502_v35, %v2243_v60  ;;  %v4500_v5 = vpop.f32.mrf.mxu3  ;;  %v1992_v35 = vadd.f32 %v4494_v33, %v4462_v38 }
 0x280   : > { %v2001_v26 = vpop.f32.mrf.mxu2 }
 0x281   : > { %v1694_v52 = vpop.f32.mrf.mxu0  ;;  %v2002_v12 = vadd.f32 %v4494_v33, %v2001_v26 }
 0x282   : > { %v1695_v48 = vadd.f32 %v4494_v33, %v1694_v52  ;;  %v2473_v52 = vrot.slane %v2472_v7, 2 }
 0x283   : > { %v2367_v18 = vmax.f32 %v2002_v12, 0.0 }
 0x284   : > { %v2244_v44 = vmax.f32 %v1695_v48, 0.0 }
 0x286   : > { %v2504_v27 = vadd.f32 %v2503_v32, %v2244_v44  ;;  %v4507_v51 = vpop.f32.mrf.mxu3  ;;  %v1995_v32 = vadd.f32 %v4494_v33, %v1994_v10  ;;  %v2363_v44 = vmax.f32 %v1992_v35, 0.0 }
 0x288   : > { %v2004_v40 = vpop.f32.mrf.mxu2  ;;  %v2643_v38 = vadd.f32 %v4456_v31, %v2363_v44 }
 0x289   : > { %v1696_v0 = vpop.f32.mrf.mxu0  ;;  %v2005_v35 = vadd.f32 %v4494_v33, %v2004_v40 }
 0x28a   : > { %v1697_v56 = vadd.f32 %v4494_v33, %v1696_v0 }
 0x28b   : > { %v2368_v31 = vmax.f32 %v2005_v35, 0.0 }
 0x28c   : > { %v2245_v46 = vmax.f32 %v1697_v56, 0.0  ;;  %v2364_v56 = vmax.f32 %v1995_v32, 0.0 }
 0x28e   : > { %v2505_v29 = vadd.f32 %v2504_v27, %v2245_v46  ;;  %v1997_v27 = vadd.f32 %v4494_v33, %v1996_v54  ;;  %v2474_v46 = vadd.f32 %v2473_v52, %v2472_v7  ;;  %v2644_v10 = vadd.f32 %v2643_v38, %v2364_v56  ;;  %v4516_v54 = vpop.f32.mrf.mxu3 }
 0x290   : > { %v2006_v53 = vpop.f32.mrf.mxu2 }
 0x291   : > { %v1699_v2 = vpop.f32.mrf.mxu0  ;;  %v2007_v7 = vadd.f32 %v4494_v33, %v2006_v53  ;;  %v1712_v53 = vadd.f32 %v4494_v33, %v3965_v49 }
 0x292   : > { %v1700_v24 = vadd.f32 %v4494_v33, %v1699_v2 }
 0x293   : > { %v2369_v40 = vmax.f32 %v2007_v7, 0.0 }
 0x294   : > { %v2246_v1 = vmax.f32 %v1700_v24, 0.0  ;;  %v2365_v24 = vmax.f32 %v1997_v27, 0.0 }
 0x296   : > { %v2506_v62 = vadd.f32 %v2505_v29, %v2246_v1  ;;  %v2645_v32 = vadd.f32 %v2644_v10, %v2365_v24  ;;  %v1710_v24 = vadd.f32 %v4494_v33, %v3947_v41  ;;  %v1715_v41 = vadd.f32 %v4494_v33, %v3974_v59 }
 0x298   : > { %v2009_v19 = vpop.f32.mrf.mxu2  ;;  %v2252_v59 = vmax.f32 %v1715_v41, 0.0 }
 0x299   : > { %v1701_v6 = vpop.f32.mrf.mxu0  ;;  %v2010_v44 = vadd.f32 %v4494_v33, %v2009_v19 }
 0x29a   : > { %v1702_v60 = vadd.f32 %v4494_v33, %v1701_v6 }
 0x29c   : > { %v2247_v48 = vmax.f32 %v1702_v60, 0.0  ;;  %v2475_v60 = vrot.slane %v2474_v46, 1 }
 0x29e   : > { %v2507_v0 = vadd.f32 %v2506_v62, %v2247_v48  ;;  %v2646_v48 = vadd.f32 %v2645_v32, %v2366_v25  ;;  %v2476_v26 = vadd.f32 %v2475_v60, %v2474_v46  ;;  %v2370_v46 = vmax.f32 %v2010_v44, 0.0 }
 0x29f   : > { %v2250_v32 = vmax.f32 %v1710_v24, 0.0  ;;  %v1717_v44 = vadd.f32 %v4494_v33, %v3985_v4  ;;  %v1722_v4 = vadd.f32 %v4494_v33, %v4004_v28 }
 0x2a0   : > { %v2508_v29 = vrot.slane %v2507_v0, 4  ;;  %v2011_v2 = vpop.f32.mrf.mxu2  ;;  %v2647_v14 = vadd.f32 %v2646_v48, %v2367_v18  ;;  %v4530_v18 = vpop.f32.mrf.mxu3 }
 0x2a1   : > { %v1704_v1 = vpop.f32.mrf.mxu0  ;;  %v2255_v28 = vmax.f32 %v1722_v4, 0.0  ;;  %v2160_v4 = vadd.f32 %v4494_v33, %v4489_v9  ;;  %v1752_v9 = vadd.f32 %v4494_v33, %v4116_v22  ;;  %v1757_v22 = vadd.f32 %v4494_v33, %v4137_v8 }
 0x2a2   : > { %v2509_v6 = vadd.f32 %v2508_v29, %v2507_v0  ;;  %v1705_v0 = vadd.f32 %v4494_v33, %v1704_v1  ;;  %v2012_v29 = vadd.f32 %v4494_v33, %v2011_v2  ;;  %v2648_v19 = vadd.f32 %v2647_v14, %v2368_v31 }
 0x2a3   : > { %v2251_v31 = vmax.f32 %v1712_v53, 0.0  ;;  %v1762_v8 = vadd.f32 %v4494_v33, %v4155_v57 }
 0x2a4   : > { %v2510_v62 = vrot.slane %v2509_v6, 2  ;;  %v2248_v35 = vmax.f32 %v1705_v0, 0.0  ;;  %v2649_v2 = vadd.f32 %v2648_v19, %v2369_v40  ;;  %v2020_v0 = vadd.f32 %v4494_v33, %v3963_v47 }
 0x2a5   : > { %v1720_v40 = vadd.f32 %v4494_v33, %v3994_v16  ;;  %v2746_v16 = vld [vmem:[%s4673_s3 + $0x10] sm:$0xff] }
 0x2a6   : > { %v2511_v52 = vadd.f32 %v2510_v62, %v2509_v6  ;;  %v2736_v6 = vmul.f32 0.00390625, %v2476_v26  ;;  %v2371_v62 = vmax.f32 %v2012_v29, 0.0  ;;  %v2374_v19 = vmax.f32 %v2020_v0, 0.0  ;;  %2800 = vmatpush.msrb.mxu1 %v2746_v16 }
 0x2a8   : > { %v2512_v27 = vrot.slane %v2511_v52, 1  ;;  %v2014_v56 = vpop.f32.mrf.mxu2 }
 0x2a9   : > { %v1706_v38 = vpop.f32.mrf.mxu0  ;;  %v2015_v1 = vadd.f32 %v4494_v33, %v2014_v56 }
 0x2aa   : > { %v2513_v25 = vadd.f32 %v2512_v27, %v2511_v52  ;;  %v1707_v12 = vadd.f32 %v4494_v33, %v1706_v38  ;;  %v2650_v52 = vadd.f32 %v2649_v2, %v2370_v46  ;;  %v2022_v38 = vadd.f32 %v4494_v33, %v3970_v55  ;;  %v2745_v55 = vld [vmem:[%s4673_s3 + $0x8] sm:$0xff]  ;;  %v4555_v2 = vpop.f32.mrf.mxu3 }
 0x2ab   : > { %v2372_v48 = vmax.f32 %v2015_v1, 0.0  ;;  %v2254_v46 = vmax.f32 %v1720_v40, 0.0  ;;  %v1725_v1 = vadd.f32 %v4494_v33, %v4012_v45  ;;  %v2744_v45 = vld [vmem:[%s4673_s3] sm:$0xff]  ;;  %2801 = vmatpush.msrb.mxu1 %v2745_v55 }
 0x2ac   : > { %v2737_v10 = vmul.f32 0.00390625, %v2513_v25  ;;  %v2249_v60 = vmax.f32 %v1707_v12, 0.0  ;;  %v2651_v56 = vadd.f32 %v2650_v52, %v2371_v62  ;;  %v2253_v25 = vmax.f32 %v1717_v44, 0.0 }
 0x2ad   : > { %v2256_v41 = vmax.f32 %v1725_v1, 0.0  ;;  %2802 = vmatpush.msrb.mxu1 %v2744_v45 }
 0x2ae   : > { %v4532_v49 = vsel %vm2772_vm2, %v2737_v10, %v2736_v6  ;;  %v2514_v7 = vadd.f32 %v2249_v60, %v2248_v35  ;;  %v2652_v24 = vadd.f32 %v2651_v56, %v2372_v48  ;;  %v2375_v10 = vmax.f32 %v2022_v38, 0.0 }
 0x2af   : > { %v1727_v60 = vadd.f32 %v4494_v33, %v4023_v3  ;;  %v1732_v3 = vadd.f32 %v4494_v33, %v4041_v37  ;;  %v1737_v56 = vadd.f32 %v4494_v33, %v4059_v17  ;;  %v1742_v37 = vadd.f32 %v4494_v33, %v4077_v58 }
 0x2b0   : > { %v2515_v26 = vadd.f32 %v2514_v7, %v2250_v32  ;;  %v2016_v27 = vpop.f32.mrf.mxu2  ;;  %v1730_v7 = vadd.f32 %v4494_v33, %v4030_v21  ;;  %v1740_v21 = vadd.f32 %v4494_v33, %v4066_v34  ;;  %v1747_v34 = vadd.f32 %v4494_v33, %v4098_v36 }
 0x2b1   : > { %v2017_v14 = vadd.f32 %v4494_v33, %v2016_v27  ;;  %v2257_v48 = vmax.f32 %v1727_v60, 0.0  ;;  %v2259_v0 = vmax.f32 %v1732_v3, 0.0  ;;  %v2261_v38 = vmax.f32 %v1737_v56, 0.0 }
 0x2b2   : > { %v2516_v29 = vadd.f32 %v2515_v26, %v2251_v31  ;;  %v2258_v44 = vmax.f32 %v1730_v7, 0.0  ;;  %v1735_v26 = vadd.f32 %v4494_v33, %v4048_v61  ;;  %v2176_v40 = vpop.f32.mrf.mxu3  ;;  %v2157_v61 = vadd.f32 %v4494_v33, %v4483_v42 }
 0x2b3   : > { %v2373_v53 = vmax.f32 %v2017_v14, 0.0  ;;  %v2162_v58 = vadd.f32 %v4494_v33, %v4497_v11  ;;  %v1750_v42 = vadd.f32 %v4494_v33, %v4105_v63  ;;  %v2265_v16 = vmax.f32 %v1747_v34, 0.0 }
 0x2b4   : > { %v2517_v12 = vadd.f32 %v2516_v29, %v2252_v59  ;;  %v2260_v59 = vmax.f32 %v1735_v26, 0.0  ;;  %v2167_v11 = vadd.f32 %v4494_v33, %v4507_v51  ;;  %v1755_v63 = vadd.f32 %v4494_v33, %v4126_v43 }
 0x2b5   : > { %v2653_v47 = vadd.f32 %v2652_v24, %v2373_v53  ;;  %v2262_v53 = vmax.f32 %v1740_v21, 0.0  ;;  %v2172_v51 = vadd.f32 %v4494_v33, %v4530_v18  ;;  %v1760_v43 = vadd.f32 %v4494_v33, %v4144_v30 }
 0x2b6   : > { %v2518_v6 = vadd.f32 %v2517_v12, %v2253_v25  ;;  %v1745_v25 = vadd.f32 %v4494_v33, %v4084_v15  ;;  %v2263_v12 = vmax.f32 %v1742_v37, 0.0  ;;  %v2165_v15 = vadd.f32 %v4494_v33, %v4500_v5 }
 0x2b7   : > { %v2654_v35 = vadd.f32 %v2653_v47, %v2374_v19  ;;  %v2429_v47 = vmax.f32 %v2157_v61, 0.0  ;;  %v2170_v5 = vadd.f32 %v4494_v33, %v4516_v54  ;;  %v2175_v54 = vadd.f32 %v4494_v33, %v4555_v2 }
 0x2b8   : > { %v2519_v62 = vadd.f32 %v2518_v6, %v2254_v46  ;;  %v2264_v46 = vmax.f32 %v1745_v25, 0.0  ;;  %v2430_v6 = vmax.f32 %v2160_v4, 0.0  ;;  %v2432_v45 = vmax.f32 %v2165_v15, 0.0 }
 0x2b9   : > { %v4560_v32 = vadd.f32 %v2654_v35, %v2375_v10  ;;  %v2719_v10 = vadd.f32 %v4458_v20, %v2429_v47  ;;  %v2431_v35 = vmax.f32 %v2162_v58, 0.0  ;;  %v2269_v26 = vmax.f32 %v1757_v22, 0.0 }
 0x2ba   : > { %v2520_v52 = vadd.f32 %v2519_v62, %v2255_v28  ;;  %v2179_v55 = vpop.f32.mrf.mxu3  ;;  %v2266_v28 = vmax.f32 %v1750_v42, 0.0  ;;  %v2435_v56 = vmax.f32 %v2172_v51, 0.0  ;;  %v2270_v18 = vmax.f32 %v1760_v43, 0.0  ;;  %v4688_v42 = vld [vmem:[#allocation5_spill] sm:$0xff] }
 0x2bb   : > { %v2720_v62 = vadd.f32 %v2719_v10, %v2430_v6  ;;  %v2180_v37 = vadd.f32 %v4494_v33, %v2179_v55  ;;  %v2271_v2 = vmax.f32 %v1762_v8, 0.0 }
 0x2bc   : > { %v2521_v31 = vadd.f32 %v2520_v52, %v2256_v41  ;;  %v2267_v41 = vmax.f32 %v1752_v9, 0.0  ;;  %v2433_v52 = vmax.f32 %v2167_v11, 0.0  ;;  %v4689_v9 = vld [vmem:[#allocation6_spill] sm:$0xff] }
 0x2bd   : > { %v2721_v20 = vadd.f32 %v2720_v62, %v2431_v35 }
 0x2be   : > { %v2522_v27 = vadd.f32 %v2521_v31, %v2257_v48  ;;  %v2268_v48 = vmax.f32 %v1755_v63, 0.0  ;;  %v4692_v63 = vld [vmem:[#allocation10_spill] sm:$0xff] }
 0x2bf   : > { %v2722_v31 = vadd.f32 %v2721_v20, %v2432_v45  ;;  %v2656_v45 = vrot.slane %v4560_v32, 4 }
 0x2c0   : > { %v2523_v14 = vadd.f32 %v2522_v27, %v2258_v44  ;;  %v2434_v44 = vmax.f32 %v2170_v5, 0.0 }
 0x2c2   : > { %v2524_v29 = vadd.f32 %v2523_v14, %v2259_v0  ;;  %v2723_v0 = vadd.f32 %v2722_v31, %v2433_v52  ;;  %v2177_v14 = vadd.f32 %v4494_v33, %v2176_v40  ;;  %v2181_v21 = vpop.f32.mrf.mxu3 }
 0x2c3   : > { %v2182_v25 = vadd.f32 %v4494_v33, %v2181_v21 }
 0x2c4   : > { %v2525_v24 = vadd.f32 %v2524_v29, %v2260_v59  ;;  %v1765_v59 = vadd.f32 %v4494_v33, %v4165_v23  ;;  %v2724_v29 = vadd.f32 %v2723_v0, %v2434_v44  ;;  %v2657_v44 = vadd.f32 %v2656_v45, %v4560_v32 }
 0x2c6   : > { %v2526_v17 = vadd.f32 %v2525_v24, %v2261_v38  ;;  %v2436_v38 = vmax.f32 %v2175_v54, 0.0  ;;  %v1767_v24 = vadd.f32 %v4494_v33, %v4176_v50  ;;  %v2725_v61 = vadd.f32 %v2724_v29, %v2435_v56 }
 0x2c7   : > { %v2272_v40 = vmax.f32 %v1765_v59, 0.0 }
 0x2c8   : > { %v2527_v19 = vadd.f32 %v2526_v17, %v2262_v53  ;;  %v2437_v53 = vmax.f32 %v2177_v14, 0.0  ;;  %v1770_v17 = vadd.f32 %v4494_v33, %v4183_v13  ;;  %v2726_v4 = vadd.f32 %v2725_v61, %v2436_v38 }
 0x2c9   : > { %v2273_v34 = vmax.f32 %v1767_v24, 0.0  ;;  %v1777_v13 = vadd.f32 %v4494_v33, %v4689_v9  ;;  %v2658_v14 = vrot.slane %v2657_v44, 2 }
 0x2ca   : > { %v2528_v1 = vadd.f32 %v2527_v19, %v2263_v12  ;;  %v2438_v12 = vmax.f32 %v2180_v37, 0.0  ;;  %v1772_v19 = vadd.f32 %v4494_v33, %v4194_v39  ;;  %v2727_v58 = vadd.f32 %v2726_v4, %v2437_v53 }
 0x2cb   : > { %v2274_v50 = vmax.f32 %v1770_v17, 0.0  ;;  %v2277_v5 = vmax.f32 %v1777_v13, 0.0  ;;  %v2659_v37 = vadd.f32 %v2658_v14, %v2657_v44 }
 0x2cc   : > { %v2529_v36 = vadd.f32 %v2528_v1, %v2264_v46  ;;  %v2439_v46 = vmax.f32 %v2182_v25, 0.0  ;;  %v1775_v1 = vadd.f32 %v4494_v33, %v4688_v42  ;;  %v2728_v15 = vadd.f32 %v2727_v58, %v2438_v12 }
 0x2cd   : > { %v2660_v25 = vrot.slane %v2659_v37, 1 }
 0x2ce   : > { %v2530_v60 = vadd.f32 %v2529_v36, %v2265_v16  ;;  %v2275_v16 = vmax.f32 %v1772_v19, 0.0  ;;  %v4690_v36 = vld [vmem:[#allocation11_spill] sm:$0xff]  ;;  %v2729_v35 = vadd.f32 %v2728_v15, %v2439_v46  ;;  %v2276_v11 = vmax.f32 %v1775_v1, 0.0 }
 0x2cf   : > { %v2582_v10 = vrot.slane %v4690_v36, 4  ;;  %v2661_v19 = vadd.f32 %v2660_v25, %v2659_v37 }
 0x2d0   : > { %v2531_v7 = vadd.f32 %v2530_v60, %v2266_v28  ;;  %v4691_v28 = vld [vmem:[#allocation7_spill] sm:$0xff]  ;;  %v2619_v60 = vrot.slane %v4692_v63, 4 }
 0x2d1   : > { %v1780_v39 = vadd.f32 %v4494_v33, %v4691_v28  ;;  %v2583_v51 = vadd.f32 %v2582_v10, %v4690_v36 }
 0x2d2   : > { %v2532_v3 = vadd.f32 %v2531_v7, %v2267_v41  ;;  %v4693_v41 = vld [vmem:[#allocation8_spill] sm:$0xff]  ;;  %v4694_v7 = vld [vmem:[#allocation9_spill] sm:$0xff] }
 0x2d3   : > { %v1782_v22 = vadd.f32 %v4494_v33, %v4693_v41  ;;  %v2693_v20 = vrot.slane %v4694_v7, 4  ;;  %v2278_v43 = vmax.f32 %v1780_v39, 0.0 }
 0x2d4   : > { %v2533_v27 = vadd.f32 %v2532_v3, %v2268_v48  ;;  %v2730_v48 = vrot.slane %v2729_v35, 4  ;;  %v2620_v3 = vadd.f32 %v2619_v60, %v4692_v63 }
 0x2d5   : > { %v2279_v54 = vmax.f32 %v1782_v22, 0.0 }
 0x2d6   : > { %v2534_v30 = vadd.f32 %v2533_v27, %v2269_v26  ;;  %v2694_v26 = vadd.f32 %v2693_v20, %v4694_v7  ;;  %v2584_v27 = vrot.slane %v2583_v51, 2  ;;  %v2731_v0 = vadd.f32 %v2730_v48, %v2729_v35 }
 0x2d7   : > { %v2621_v56 = vrot.slane %v2620_v3, 2 }
 0x2d8   : > { %v2535_v57 = vadd.f32 %v2534_v30, %v2270_v18  ;;  %v2695_v18 = vrot.slane %v2694_v26, 2  ;;  %v2585_v30 = vadd.f32 %v2584_v27, %v2583_v51  ;;  %v2732_v21 = vrot.slane %v2731_v0, 2 }
 0x2d9   : > { %v2622_v29 = vadd.f32 %v2621_v56, %v2620_v3 }
 0x2da   : > { %v2536_v23 = vadd.f32 %v2535_v57, %v2271_v2  ;;  %v2696_v2 = vadd.f32 %v2695_v18, %v2694_v26  ;;  %v2586_v57 = vrot.slane %v2585_v30, 1  ;;  %v2733_v32 = vadd.f32 %v2732_v21, %v2731_v0 }
 0x2db   : > { %v2623_v61 = vrot.slane %v2622_v29, 1 }
 0x2dc   : > { %v2537_v47 = vadd.f32 %v2536_v23, %v2272_v40  ;;  %v2697_v40 = vrot.slane %v2696_v2, 1  ;;  %v2587_v23 = vadd.f32 %v2586_v57, %v2585_v30  ;;  %v2734_v4 = vrot.slane %v2733_v32, 1 }
 0x2dd   : > { %v2624_v12 = vadd.f32 %v2623_v61, %v2622_v29 }
 0x2de   : > { %v2538_v6 = vadd.f32 %v2537_v47, %v2273_v34  ;;  %v2698_v47 = vadd.f32 %v2697_v40, %v2696_v2  ;;  %v2735_v46 = vadd.f32 %v2734_v4, %v2733_v32 }
 0x2df   : > { %v2740_v42 = vmul.f32 0.00390625, %v2624_v12 }
 0x2e0   : > { %v2539_v55 = vadd.f32 %v2538_v6, %v2274_v50  ;;  %v2739_v50 = vmul.f32 0.00390625, %v2587_v23  ;;  %v2741_v6 = vmul.f32 0.00390625, %v2661_v19  ;;  %v2743_v13 = vmul.f32 0.00390625, %v2735_v46 }
 0x2e2   : > { %v2540_v62 = vadd.f32 %v2539_v55, %v2275_v16  ;;  %v2742_v16 = vmul.f32 0.00390625, %v2698_v47 }
 0x2e4   : > { %v2541_v52 = vadd.f32 %v2540_v62, %v2276_v11 }
 0x2e6   : > { %v2542_v31 = vadd.f32 %v2541_v52, %v2277_v5 }
 0x2e8   : > { %v2543_v8 = vadd.f32 %v2542_v31, %v2278_v43 }
 0x2ea   : > { %v2544_v33 = vadd.f32 %v2543_v8, %v2279_v54 }
 0x2ec   : > { %v2545_v59 = vrot.slane %v2544_v33, 4 }
 0x2ee   : > { %v2546_v38 = vadd.f32 %v2545_v59, %v2544_v33 }
 0x2f0   : > { %v2547_v24 = vrot.slane %v2546_v38, 2 }
 0x2f2   : > { %v2548_v53 = vadd.f32 %v2547_v24, %v2546_v38 }
 0x2f4   : > { %v2549_v17 = vrot.slane %v2548_v53, 1 }
 0x2f6   : > { %v2550_v34 = vadd.f32 %v2549_v17, %v2548_v53 }
 0x2f8   : > { %v2738_v58 = vmul.f32 0.00390625, %v2550_v34 }
 0x2fa   : > { %v2775_v1 = vsel %vm2774_vm3, %v2738_v58, %v4532_v49  ;;  %v3721_v49 = vld [vmem:[%s4674_s4] ss:$0 sm:$0xff] }
 0x2fb   : > { %v2777_v15 = vsel %vm2776_vm4, %v2739_v50, %v2775_v1 }
 0x2fc   : > { %v2779_v9 = vsel %vm2778_vm5, %v2740_v42, %v2777_v15 }
 0x2fd   : > { %v2781_v55 = vsel %vm2780_vm6, %v2741_v6, %v2779_v9 }
 0x2fe   : > { %v2783_v36 = vsel %vm2782_vm7, %v2742_v16, %v2781_v55 }
 0x2ff   : > { %v2785_v10 = vsel %vm2784_vm8, %v2743_v13, %v2783_v36 }
 0x300   : > { %2803 = vmatmul.f32.vlgmr.msrb.gmra.mxu1 %v2785_v10 }
 0x37d   : > { %v2804_v35 = vpop.f32.mrf.mxu1 }
 0x37e   : > { %v2805_v11 = vadd.f32 %v3721_v49, %v2804_v35 }
 0x380   : > { %2807 = vst [vmem:[%s218_s14] sm:$0xff] %v2805_v11 }
 0x381   : > { %3751 = shalt.err (!%p3748_p3)
}
 0x382   : > { %3681 = dma.vmem_to_hbm [thread:$0]  (%p3856_p5), %s2822_s16, 128, %s2824_s17, %s2809_s23  }
 0x383 PF: > { %p3687_p4 = scmp.ge.s32.totalorder %s3786_s21, 2  ;;  %s2835_s7 = sand.u32 1, %s3774_s18  }
 0x384   : > { %s2836_s9 = scalar_lea.sflag [#allocation3], %s2835_s7 }
 0x385   : > { %p3684_p7 = pnand %p3687_p4, %p3860_p6 }
 0x387   : > { %p3685_p8 = pneg %p3684_p7 }
 0x389   : > { %3769 = dma.done.wait (%p3685_p8), %s2836_s9, 128  }
 0x38a   : > { %3771 = vsyncadd (%p3685_p8), %s2836_s9, 4294967168  ;;  %p15_p9 = scmp.ge.s32.totalorder %s3843_s24, 4   ;;  %s4695_s18 = smov %s3778_s19 }
 0x38b   : > { %s4696_s19 = smov %s3782_s20  ;;  %s4697_s20 = smov %s3854_s27 }
 0x38c   : > { %s4698_s21 = smov %s3843_s24  ;;  %17 = sbr.rel (!%p15_p9) target bundleno = 3 (0x3), region = 75 }
 0x391   :  { %2842 = vsyncpa [#allocation3], 1 }
 0x392   :  { %2844 = vsyncpa [#allocation3 + $0x1], 1 }

</bundles_post_ra>
